<compile_context>
chip_gen: v5e
topology: v5e:2x2
jax: 0.10.0
libtpu: 0.0.40
codegen_flags: <defaults>
</compile_context>

<pallas_src>
import math

import jax
import jax.numpy as jnp
from jax.experimental import pallas as pl
from jax.experimental.pallas import tpu as pltpu

LEAKY_SLOPE = 0.25
KSIZE, STRIDE, PAD = 4, 2, 1


def _out_len(L):
    return (L + 2 * PAD - KSIZE) // STRIDE + 1


# --------------------------------------------------------------------------
# Parameter construction (deterministic, synthetic; mirrors the torch module)
# --------------------------------------------------------------------------
def spectral_normalize(w, key, n_iters=1):
    # TODO(synk): torch's spectral_norm keeps persistent u/v buffers updated on
    # every forward; here it is applied once at parameter-setup time.
    cout = w.shape[0]
    wm = w.reshape(cout, -1)
    u = jax.random.normal(key, (cout,), jnp.float32)
    u = u / (jnp.linalg.norm(u) + 1e-12)
    v = None
    for _ in range(n_iters):
        v = wm.T @ u
        v = v / (jnp.linalg.norm(v) + 1e-12)
        u = wm @ v
        u = u / (jnp.linalg.norm(u) + 1e-12)
    sigma = u @ (wm @ v)
    return w / sigma


def build_params(key, input_dim, n_channels, seq_len, max_layers,
                 minibatch_out_features, kernel_dims):
    keys = jax.random.split(key, 8 * max_layers + 8)
    kidx = 0
    layers, res_identity = [], []
    in_ch, ch, cur = input_dim, n_channels, seq_len
    for i in range(max_layers):
        out_len = _out_len(cur)
        w = jax.random.normal(keys[kidx], (ch, in_ch, KSIZE), jnp.float32) \
            * (1.0 / math.sqrt(in_ch * KSIZE)); kidx += 1
        b = jax.random.normal(keys[kidx], (ch,), jnp.float32) * 0.1; kidx += 1
        if i > 0:
            w = spectral_normalize(w, keys[kidx]); kidx += 1
        if in_ch != ch:
            wr_full = jax.random.normal(keys[kidx], (ch, in_ch, 1), jnp.float32) \
                * (1.0 / math.sqrt(in_ch)); kidx += 1
            br = jax.random.normal(keys[kidx], (ch,), jnp.float32) * 0.1; kidx += 1
            wr = wr_full[:, :, 0].T                           # (in_ch, ch)
            res_identity.append(False)
        else:                                                 # nn.Identity residual
            wr = jnp.eye(in_ch, dtype=jnp.float32)
            br = jnp.zeros((ch,), jnp.float32)
            res_identity.append(True)
        layers.append((w, b, wr, br))
        in_ch, ch, cur = ch, ch * 2, out_len
        if cur <= 4:
            break
    T = jax.random.normal(keys[kidx],
                          (in_ch, minibatch_out_features, kernel_dims),
                          jnp.float32); kidx += 1
    fc_w = jax.random.normal(keys[kidx], (1, in_ch + minibatch_out_features),
                             jnp.float32) \
        * (1.0 / math.sqrt(in_ch + minibatch_out_features)); kidx += 1
    fc_b = jax.random.normal(keys[kidx], (1,), jnp.float32) * 0.1; kidx += 1
    # NOTE: self.final_conv is never used in forward() -> omitted.
    return {"layers": layers, "res_identity": res_identity, "T": T,
            "fc_w": fc_w, "fc_b": fc_b, "in_ch": in_ch, "seq_len": seq_len}


# --------------------------------------------------------------------------
# One-time weight packing (hoisted out of the forward hot path)
# --------------------------------------------------------------------------
def prepare_params(params, batch):
    """Pack all weights into kernel-ready layout once.  Returns (plan, flat)."""
    layers_plan, flat = [], []
    L = params["seq_len"]
    for (w, b, wr, br) in params["layers"]:
        cout, cin, k = w.shape
        assert k == KSIZE and L % 2 == 0
        Lout = _out_len(L)
        # conv taps concatenated row-wise: row t*cin + c multiplies y_pad[2p+t, c]
        wcat = jnp.transpose(w, (2, 1, 0)).reshape(k * cin, cout)
        # block-diagonal pack: [4-tap conv -> lanes 0:Cout | 1x1 residual -> lanes Cout:2Cout]
        wbig = jnp.zeros((5 * cin, 2 * cout), jnp.float32)
        wbig = wbig.at[:k * cin, :cout].set(wcat)
        wbig = wbig.at[k * cin:, cout:].set(wr)                # identity layers: wr = I
        bias2 = jnp.concatenate([b, br]).reshape(1, 2 * cout)
        flat += [wbig.astype(jnp.bfloat16), bias2]
        layers_plan.append({"L": int(L), "C": int(cin),
                            "Cout": int(cout), "Lout": int(Lout)})
        L = Lout
    T = params["T"]
    C, O, K = T.shape
    # column k*O + o == T[:, o, k]  (k-major grouping -> per-o sum over k is a lane-group sum)
    t2 = jnp.transpose(T, (0, 2, 1)).reshape(C, K * O)
    wfc = params["fc_w"].T                                     # (C + O, 1)
    bfc = params["fc_b"].reshape(1, 1)
    flat += [t2.astype(jnp.bfloat16), wfc.astype(jnp.bfloat16), bfc]
    plan = {"batch": int(batch), "layers": layers_plan,
            "out_features": int(O), "kernel_dims": int(K)}
    return plan, flat


# --------------------------------------------------------------------------
# Single fused kernel: all conv blocks + pool + minibatch-disc + fc
# --------------------------------------------------------------------------
def make_kernel(plan):
    B = plan["batch"]
    layers = plan["layers"]
    n_layers = len(layers)
    O = plan["out_features"]
    K = plan["kernel_dims"]
    n_in = 1 + 2 * n_layers + 3

    def kernel(*refs):
        x_ref = refs[0]                              # (B*(L0+2)+2, C0) padded layout
        w_refs = refs[1:1 + 2 * n_layers]
        t2_ref, wfc_ref, bfc_ref = refs[1 + 2 * n_layers:n_in]
        out_ref = refs[n_in]
        scratch = refs[n_in + 1:]                    # per-layer padded activation bufs

        cur = x_ref
        out_full = None
        for li, d in enumerate(layers):
            L, C, Cout, Lout = d["L"], d["C"], d["Cout"], d["Lout"]
            N = B * (Lout + 1)                       # one junk row per batch chunk
            # pad + stride-2 + 4-tap im2col via exact strided sublane loads
            taps = [cur[pl.ds(t, N, stride=2), :] for t in range(KSIZE)]
            # residual (1x1 conv / identity) input: first L_out(+1) rows per chunk
            res_in = jnp.concatenate(
                [cur[pl.ds(b * (L + 2) + 1, Lout + 1), :] for b in range(B)],
                axis=0)                                              # (N, C)
            lhs = jnp.concatenate(taps + [res_in], axis=-1)          # (N, 5C)
            w = w_refs[2 * li][...]                                  # (5C, 2Cout) bf16
            bias2 = w_refs[2 * li + 1][...]                          # (1, 2Cout) f32
            # one MXU push per layer for the whole batch (conv + residual fused)
            z = jnp.dot(lhs.astype(jnp.bfloat16), w,
                        preferred_element_type=jnp.float32)          # (N, 2Cout)
            conv = z[:, :Cout] + bias2[:, :Cout]
            conv = jnp.maximum(conv, LEAKY_SLOPE * conv)             # LeakyReLU(0.25)
            out_full = conv + z[:, Cout:] + bias2[:, Cout:]          # (N, Cout)
            if li + 1 < n_layers:
                nxt = scratch[li]                # (B*(Lout+2)+2, Cout), zero-padded
                nxt[...] = jnp.zeros(nxt.shape, nxt.dtype)
                for b in range(B):               # drop junk row, re-chunk with padding
                    nxt[pl.ds(b * (Lout + 2) + 1, Lout), :] = \
                        out_full[b * (Lout + 1):b * (Lout + 1) + Lout, :]
                cur = nxt

        # AdaptiveAvgPool1d(1): mean over the real positions of each batch chunk
        Lf = layers[-1]["Lout"]
        feats = jnp.concatenate(
            [jnp.mean(out_full[b * (Lf + 1):b * (Lf + 1) + Lf, :],
                      axis=0, keepdims=True) for b in range(B)], axis=0)  # (B, Cf)

        # MinibatchDiscrimination: one matmul + one broadcast |diff| + K-group sum
        m = jnp.dot(feats.astype(jnp.bfloat16), t2_ref[...],
                    preferred_element_type=jnp.float32)                   # (B, K*O)
        d3 = jnp.abs(m[:, None, :] - m[None, :, :])                       # (B, B, K*O)
        acc = d3[:, :, 0:O]
        for k in range(1, K):                                             # lane-group sum over K
            acc = acc + d3[:, :, k * O:(k + 1) * O]
        mb = jnp.sum(jnp.exp(-acc), axis=0) - 1.0                         # (B, O)

        # final Linear on [feats, mb]
        enh = jnp.concatenate([feats, mb], axis=-1)                       # (B, Cf+O)
        y = jnp.dot(enh.astype(jnp.bfloat16), wfc_ref[...],
                    preferred_element_type=jnp.float32) + bfc_ref[...]
        out_ref[...] = y.astype(out_ref.dtype)

    return kernel


def discriminator_forward(x_ncl, plan, flat):
    B = int(x_ncl.shape[0])
    assert B == plan["batch"]
    L0 = plan["layers"][0]["L"]
    C0 = plan["layers"][0]["C"]
    # wrapper-side layout plumbing (one-time per forward, outside the kernel):
    # NCL -> NLC, fold conv padding into per-batch chunks, flatten batch-major,
    # add 2 zero tail rows as headroom for the strided tap loads.
    x = jnp.transpose(x_ncl, (0, 2, 1))
    x = jnp.pad(x, ((0, 0), (1, 1), (0, 0)))
    x = x.reshape(B * (L0 + 2), C0)
    x = jnp.pad(x, ((0, 2), (0, 0)))
    scratch = [pltpu.VMEM((B * (d["Lout"] + 2) + 2, d["Cout"]), jnp.float32)
               for d in plan["layers"][:-1]]
    return pl.pallas_call(
        make_kernel(plan),
        out_shape=jax.ShapeDtypeStruct((B, 1), jnp.float32),
        scratch_shapes=scratch,
        compiler_params=pltpu.CompilerParams(vmem_limit_bytes=32 * 1024 * 1024),
    )(x, *flat)                                                        # (B, 1)


# --------------------------------------------------------------------------
# Pure-JAX reference (high precision) for correctness checking
# --------------------------------------------------------------------------
def reference_forward(x_ncl, params):
    hp = jax.lax.Precision.HIGHEST
    x = x_ncl
    for (w, b, wr, br) in params["layers"]:
        L_out = _out_len(x.shape[-1])
        out = jax.lax.conv_general_dilated(
            x, w, (STRIDE,), [(PAD, PAD)],
            dimension_numbers=("NCH", "OIH", "NCH"), precision=hp)
        out = out + b[None, :, None]
        out = jnp.where(out > 0, out, LEAKY_SLOPE * out)
        res = jnp.einsum("bcl,cd->bdl", x, wr, precision=hp) + br[None, :, None]
        x = out + res[..., :L_out]
    feats = jnp.mean(x, axis=-1)                                       # (B, C)
    T = params["T"]
    C, O, K = T.shape
    M = jnp.dot(feats, T.reshape(C, -1), precision=hp).reshape(feats.shape[0], O, K)
    mb = jnp.exp(-jnp.abs(M[None] - M[:, None]).sum(-1)).sum(0) - 1.0
    enh = jnp.concatenate([feats, mb], axis=1)
    y = jnp.dot(enh, params["fc_w"].T, precision=hp) + params["fc_b"]
    return y


if __name__ == "__main__":
    # input_dim=2 channels, seq_len=64 -> 4 conv blocks (64->32->16->8->4),
    # final channels = 32, minibatch_out=10, kernel_dims=5.
    B, input_dim, seq_len = 4, 2, 64
    key = jax.random.PRNGKey(0)
    kx, kp = jax.random.split(key)
    x = jax.random.normal(kx, (B, input_dim, seq_len), jnp.float32)    # NCL like torch

    params = build_params(kp, input_dim, n_channels=4, seq_len=seq_len,
                          max_layers=8, minibatch_out_features=10,
                          kernel_dims=5)
    plan, flat = prepare_params(params, batch=B)                       # one-time packing

    y = discriminator_forward(x, plan, flat)
    y = jax.block_until_ready(y)

    y_ref = reference_forward(x, params)
    assert y.shape == (B, 1), y.shape
    err = float(jnp.max(jnp.abs(y - y_ref)))
    # tolerance covers bf16 weight/activation quantization on the MXU path
    assert bool(jnp.allclose(y, y_ref, rtol=2e-2, atol=3e-2)), \
        f"mismatch: max abs err {err}"
    print("KERNEL_OK")
</pallas_src>

<mosaic_0001>
module attributes {stable_mosaic.version = 11 : i64} {
  func.func @kernel(%arg0: memref<266x2xf32, #tpu.memory_space<vmem>>, %arg1: memref<10x8xbf16, #tpu.memory_space<vmem>>, %arg2: memref<1x8xf32, #tpu.memory_space<vmem>>, %arg3: memref<20x16xbf16, #tpu.memory_space<vmem>>, %arg4: memref<1x16xf32, #tpu.memory_space<vmem>>, %arg5: memref<40x32xbf16, #tpu.memory_space<vmem>>, %arg6: memref<1x32xf32, #tpu.memory_space<vmem>>, %arg7: memref<80x64xbf16, #tpu.memory_space<vmem>>, %arg8: memref<1x64xf32, #tpu.memory_space<vmem>>, %arg9: memref<32x50xbf16, #tpu.memory_space<vmem>>, %arg10: memref<42x1xbf16, #tpu.memory_space<vmem>>, %arg11: memref<1x1xf32, #tpu.memory_space<vmem>>, %arg12: memref<4x1xf32, #tpu.memory_space<vmem>>, %arg13: memref<138x4xf32, #tpu.memory_space<vmem>>, %arg14: memref<74x8xf32, #tpu.memory_space<vmem>>, %arg15: memref<42x16xf32, #tpu.memory_space<vmem>>) attributes {dimension_semantics = [], scalar_prefetch = 0 : i64, scratch_operands = 3 : i64, tpu.core_type = #tpu.core_type<tc>} {
    %c0 = arith.constant 0 : index
    %c0_0 = arith.constant 0 : index
    %0 = tpu.strided_load %arg0[%c0, %c0_0] {strides = array<i32: 2, 1>} : memref<266x2xf32, #tpu.memory_space<vmem>>, vector<132x2xf32>
    %c1 = arith.constant 1 : index
    %c0_1 = arith.constant 0 : index
    %1 = tpu.strided_load %arg0[%c1, %c0_1] {strides = array<i32: 2, 1>} : memref<266x2xf32, #tpu.memory_space<vmem>>, vector<132x2xf32>
    %c2 = arith.constant 2 : index
    %c0_2 = arith.constant 0 : index
    %2 = tpu.strided_load %arg0[%c2, %c0_2] {strides = array<i32: 2, 1>} : memref<266x2xf32, #tpu.memory_space<vmem>>, vector<132x2xf32>
    %c3 = arith.constant 3 : index
    %c0_3 = arith.constant 0 : index
    %3 = tpu.strided_load %arg0[%c3, %c0_3] {strides = array<i32: 2, 1>} : memref<266x2xf32, #tpu.memory_space<vmem>>, vector<132x2xf32>
    %c1_4 = arith.constant 1 : index
    %c0_5 = arith.constant 0 : index
    %4 = vector.load %arg0[%c1_4, %c0_5] : memref<266x2xf32, #tpu.memory_space<vmem>>, vector<33x2xf32>
    %c67 = arith.constant 67 : index
    %c0_6 = arith.constant 0 : index
    %5 = vector.load %arg0[%c67, %c0_6] : memref<266x2xf32, #tpu.memory_space<vmem>>, vector<33x2xf32>
    %c133 = arith.constant 133 : index
    %c0_7 = arith.constant 0 : index
    %6 = vector.load %arg0[%c133, %c0_7] : memref<266x2xf32, #tpu.memory_space<vmem>>, vector<33x2xf32>
    %c199 = arith.constant 199 : index
    %c0_8 = arith.constant 0 : index
    %7 = vector.load %arg0[%c199, %c0_8] : memref<266x2xf32, #tpu.memory_space<vmem>>, vector<33x2xf32>
    %8 = tpu.concatenate %4, %5, %6, %7 in 0 : vector<33x2xf32>, vector<33x2xf32>, vector<33x2xf32>, vector<33x2xf32> -> vector<132x2xf32>
    %9 = tpu.concatenate %0, %1, %2, %3, %8 in 1 : vector<132x2xf32>, vector<132x2xf32>, vector<132x2xf32>, vector<132x2xf32>, vector<132x2xf32> -> vector<132x10xf32>
    %c0_9 = arith.constant 0 : index
    %c0_10 = arith.constant 0 : index
    %10 = vector.load %arg1[%c0_9, %c0_10] : memref<10x8xbf16, #tpu.memory_space<vmem>>, vector<10x8xbf16>
    %c0_11 = arith.constant 0 : index
    %c0_12 = arith.constant 0 : index
    %11 = vector.load %arg2[%c0_11, %c0_12] : memref<1x8xf32, #tpu.memory_space<vmem>>, vector<1x8xf32>
    %12 = arith.truncf %9 : vector<132x10xf32> to vector<132x10xbf16>
    %cst = arith.constant dense<0.000000e+00> : vector<132x8xf32>
    %13 = tpu.matmul %12, %10, %cst {dimension_numbers = #tpu.dot_dimension_numbers<[1], [0], [0], [1], [0, 0, 1, 1], [], []>} : vector<132x10xbf16>, vector<10x8xbf16>, vector<132x8xf32> -> vector<132x8xf32>
    %14 = vector.extract_strided_slice %13 {offsets = [0, 0], sizes = [132, 4], strides = [1, 1]} : vector<132x8xf32> to vector<132x4xf32>
    %15 = vector.extract_strided_slice %11 {offsets = [0, 0], sizes = [1, 4], strides = [1, 1]} : vector<1x8xf32> to vector<1x4xf32>
    %16 = vector.broadcast %15 : vector<1x4xf32> to vector<132x4xf32>
    %17 = arith.addf %14, %16 : vector<132x4xf32>
    %cst_13 = arith.constant 2.500000e-01 : f32
    %18 = vector.broadcast %cst_13 : f32 to vector<132x4xf32>
    %19 = arith.mulf %18, %17 : vector<132x4xf32>
    %20 = arith.maximumf %17, %19 : vector<132x4xf32>
    %21 = vector.extract_strided_slice %13 {offsets = [0, 4], sizes = [132, 4], strides = [1, 1]} : vector<132x8xf32> to vector<132x4xf32>
    %22 = arith.addf %20, %21 : vector<132x4xf32>
    %23 = vector.extract_strided_slice %11 {offsets = [0, 4], sizes = [1, 4], strides = [1, 1]} : vector<1x8xf32> to vector<1x4xf32>
    %24 = vector.broadcast %23 : vector<1x4xf32> to vector<132x4xf32>
    %25 = arith.addf %22, %24 : vector<132x4xf32>
    %cst_14 = arith.constant 0.000000e+00 : f32
    %26 = vector.broadcast %cst_14 : f32 to vector<138x4xf32>
    %c0_15 = arith.constant 0 : index
    %c0_16 = arith.constant 0 : index
    %27 = vector.load %arg13[%c0_15, %c0_16] : memref<138x4xf32, #tpu.memory_space<vmem>>, vector<138x4xf32>
    tpu.vector_store %arg13[%c0_15, %c0_16], %26 {strides = array<i32>} : memref<138x4xf32, #tpu.memory_space<vmem>>, vector<138x4xf32>,
    %28 = vector.extract_strided_slice %25 {offsets = [0, 0], sizes = [32, 4], strides = [1, 1]} : vector<132x4xf32> to vector<32x4xf32>
    %c1_17 = arith.constant 1 : index
    %c0_18 = arith.constant 0 : index
    %29 = vector.load %arg13[%c1_17, %c0_18] : memref<138x4xf32, #tpu.memory_space<vmem>>, vector<32x4xf32>
    tpu.vector_store %arg13[%c1_17, %c0_18], %28 {strides = array<i32>} : memref<138x4xf32, #tpu.memory_space<vmem>>, vector<32x4xf32>,
    %30 = vector.extract_strided_slice %25 {offsets = [33, 0], sizes = [32, 4], strides = [1, 1]} : vector<132x4xf32> to vector<32x4xf32>
    %c35 = arith.constant 35 : index
    %c0_19 = arith.constant 0 : index
    %31 = vector.load %arg13[%c35, %c0_19] : memref<138x4xf32, #tpu.memory_space<vmem>>, vector<32x4xf32>
    tpu.vector_store %arg13[%c35, %c0_19], %30 {strides = array<i32>} : memref<138x4xf32, #tpu.memory_space<vmem>>, vector<32x4xf32>,
    %32 = vector.extract_strided_slice %25 {offsets = [66, 0], sizes = [32, 4], strides = [1, 1]} : vector<132x4xf32> to vector<32x4xf32>
    %c69 = arith.constant 69 : index
    %c0_20 = arith.constant 0 : index
    %33 = vector.load %arg13[%c69, %c0_20] : memref<138x4xf32, #tpu.memory_space<vmem>>, vector<32x4xf32>
    tpu.vector_store %arg13[%c69, %c0_20], %32 {strides = array<i32>} : memref<138x4xf32, #tpu.memory_space<vmem>>, vector<32x4xf32>,
    %34 = vector.extract_strided_slice %25 {offsets = [99, 0], sizes = [32, 4], strides = [1, 1]} : vector<132x4xf32> to vector<32x4xf32>
    %c103 = arith.constant 103 : index
    %c0_21 = arith.constant 0 : index
    %35 = vector.load %arg13[%c103, %c0_21] : memref<138x4xf32, #tpu.memory_space<vmem>>, vector<32x4xf32>
    tpu.vector_store %arg13[%c103, %c0_21], %34 {strides = array<i32>} : memref<138x4xf32, #tpu.memory_space<vmem>>, vector<32x4xf32>,
    %c0_22 = arith.constant 0 : index
    %c0_23 = arith.constant 0 : index
    %36 = tpu.strided_load %arg13[%c0_22, %c0_23] {strides = array<i32: 2, 1>} : memref<138x4xf32, #tpu.memory_space<vmem>>, vector<68x4xf32>
    %c1_24 = arith.constant 1 : index
    %c0_25 = arith.constant 0 : index
    %37 = tpu.strided_load %arg13[%c1_24, %c0_25] {strides = array<i32: 2, 1>} : memref<138x4xf32, #tpu.memory_space<vmem>>, vector<68x4xf32>
    %c2_26 = arith.constant 2 : index
    %c0_27 = arith.constant 0 : index
    %38 = tpu.strided_load %arg13[%c2_26, %c0_27] {strides = array<i32: 2, 1>} : memref<138x4xf32, #tpu.memory_space<vmem>>, vector<68x4xf32>
    %c3_28 = arith.constant 3 : index
    %c0_29 = arith.constant 0 : index
    %39 = tpu.strided_load %arg13[%c3_28, %c0_29] {strides = array<i32: 2, 1>} : memref<138x4xf32, #tpu.memory_space<vmem>>, vector<68x4xf32>
    %c1_30 = arith.constant 1 : index
    %c0_31 = arith.constant 0 : index
    %40 = vector.load %arg13[%c1_30, %c0_31] : memref<138x4xf32, #tpu.memory_space<vmem>>, vector<17x4xf32>
    %c35_32 = arith.constant 35 : index
    %c0_33 = arith.constant 0 : index
    %41 = vector.load %arg13[%c35_32, %c0_33] : memref<138x4xf32, #tpu.memory_space<vmem>>, vector<17x4xf32>
    %c69_34 = arith.constant 69 : index
    %c0_35 = arith.constant 0 : index
    %42 = vector.load %arg13[%c69_34, %c0_35] : memref<138x4xf32, #tpu.memory_space<vmem>>, vector<17x4xf32>
    %c103_36 = arith.constant 103 : index
    %c0_37 = arith.constant 0 : index
    %43 = vector.load %arg13[%c103_36, %c0_37] : memref<138x4xf32, #tpu.memory_space<vmem>>, vector<17x4xf32>
    %44 = tpu.concatenate %40, %41, %42, %43 in 0 : vector<17x4xf32>, vector<17x4xf32>, vector<17x4xf32>, vector<17x4xf32> -> vector<68x4xf32>
    %45 = tpu.concatenate %36, %37, %38, %39, %44 in 1 : vector<68x4xf32>, vector<68x4xf32>, vector<68x4xf32>, vector<68x4xf32>, vector<68x4xf32> -> vector<68x20xf32>
    %c0_38 = arith.constant 0 : index
    %c0_39 = arith.constant 0 : index
    %46 = vector.load %arg3[%c0_38, %c0_39] : memref<20x16xbf16, #tpu.memory_space<vmem>>, vector<20x16xbf16>
    %c0_40 = arith.constant 0 : index
    %c0_41 = arith.constant 0 : index
    %47 = vector.load %arg4[%c0_40, %c0_41] : memref<1x16xf32, #tpu.memory_space<vmem>>, vector<1x16xf32>
    %48 = arith.truncf %45 : vector<68x20xf32> to vector<68x20xbf16>
    %cst_42 = arith.constant dense<0.000000e+00> : vector<68x16xf32>
    %49 = tpu.matmul %48, %46, %cst_42 {dimension_numbers = #tpu.dot_dimension_numbers<[1], [0], [0], [1], [0, 0, 1, 1], [], []>} : vector<68x20xbf16>, vector<20x16xbf16>, vector<68x16xf32> -> vector<68x16xf32>
    %50 = vector.extract_strided_slice %49 {offsets = [0, 0], sizes = [68, 8], strides = [1, 1]} : vector<68x16xf32> to vector<68x8xf32>
    %51 = vector.extract_strided_slice %47 {offsets = [0, 0], sizes = [1, 8], strides = [1, 1]} : vector<1x16xf32> to vector<1x8xf32>
    %52 = vector.broadcast %51 : vector<1x8xf32> to vector<68x8xf32>
    %53 = arith.addf %50, %52 : vector<68x8xf32>
    %cst_43 = arith.constant 2.500000e-01 : f32
    %54 = vector.broadcast %cst_43 : f32 to vector<68x8xf32>
    %55 = arith.mulf %54, %53 : vector<68x8xf32>
    %56 = arith.maximumf %53, %55 : vector<68x8xf32>
    %57 = vector.extract_strided_slice %49 {offsets = [0, 8], sizes = [68, 8], strides = [1, 1]} : vector<68x16xf32> to vector<68x8xf32>
    %58 = arith.addf %56, %57 : vector<68x8xf32>
    %59 = vector.extract_strided_slice %47 {offsets = [0, 8], sizes = [1, 8], strides = [1, 1]} : vector<1x16xf32> to vector<1x8xf32>
    %60 = vector.broadcast %59 : vector<1x8xf32> to vector<68x8xf32>
    %61 = arith.addf %58, %60 : vector<68x8xf32>
    %cst_44 = arith.constant 0.000000e+00 : f32
    %62 = vector.broadcast %cst_44 : f32 to vector<74x8xf32>
    %c0_45 = arith.constant 0 : index
    %c0_46 = arith.constant 0 : index
    %63 = vector.load %arg14[%c0_45, %c0_46] : memref<74x8xf32, #tpu.memory_space<vmem>>, vector<74x8xf32>
    tpu.vector_store %arg14[%c0_45, %c0_46], %62 {strides = array<i32>} : memref<74x8xf32, #tpu.memory_space<vmem>>, vector<74x8xf32>,
    %64 = vector.extract_strided_slice %61 {offsets = [0, 0], sizes = [16, 8], strides = [1, 1]} : vector<68x8xf32> to vector<16x8xf32>
    %c1_47 = arith.constant 1 : index
    %c0_48 = arith.constant 0 : index
    %65 = vector.load %arg14[%c1_47, %c0_48] : memref<74x8xf32, #tpu.memory_space<vmem>>, vector<16x8xf32>
    tpu.vector_store %arg14[%c1_47, %c0_48], %64 {strides = array<i32>} : memref<74x8xf32, #tpu.memory_space<vmem>>, vector<16x8xf32>,
    %66 = vector.extract_strided_slice %61 {offsets = [17, 0], sizes = [16, 8], strides = [1, 1]} : vector<68x8xf32> to vector<16x8xf32>
    %c19 = arith.constant 19 : index
    %c0_49 = arith.constant 0 : index
    %67 = vector.load %arg14[%c19, %c0_49] : memref<74x8xf32, #tpu.memory_space<vmem>>, vector<16x8xf32>
    tpu.vector_store %arg14[%c19, %c0_49], %66 {strides = array<i32>} : memref<74x8xf32, #tpu.memory_space<vmem>>, vector<16x8xf32>,
    %68 = vector.extract_strided_slice %61 {offsets = [34, 0], sizes = [16, 8], strides = [1, 1]} : vector<68x8xf32> to vector<16x8xf32>
    %c37 = arith.constant 37 : index
    %c0_50 = arith.constant 0 : index
    %69 = vector.load %arg14[%c37, %c0_50] : memref<74x8xf32, #tpu.memory_space<vmem>>, vector<16x8xf32>
    tpu.vector_store %arg14[%c37, %c0_50], %68 {strides = array<i32>} : memref<74x8xf32, #tpu.memory_space<vmem>>, vector<16x8xf32>,
    %70 = vector.extract_strided_slice %61 {offsets = [51, 0], sizes = [16, 8], strides = [1, 1]} : vector<68x8xf32> to vector<16x8xf32>
    %c55 = arith.constant 55 : index
    %c0_51 = arith.constant 0 : index
    %71 = vector.load %arg14[%c55, %c0_51] : memref<74x8xf32, #tpu.memory_space<vmem>>, vector<16x8xf32>
    tpu.vector_store %arg14[%c55, %c0_51], %70 {strides = array<i32>} : memref<74x8xf32, #tpu.memory_space<vmem>>, vector<16x8xf32>,
    %c0_52 = arith.constant 0 : index
    %c0_53 = arith.constant 0 : index
    %72 = tpu.strided_load %arg14[%c0_52, %c0_53] {strides = array<i32: 2, 1>} : memref<74x8xf32, #tpu.memory_space<vmem>>, vector<36x8xf32>
    %c1_54 = arith.constant 1 : index
    %c0_55 = arith.constant 0 : index
    %73 = tpu.strided_load %arg14[%c1_54, %c0_55] {strides = array<i32: 2, 1>} : memref<74x8xf32, #tpu.memory_space<vmem>>, vector<36x8xf32>
    %c2_56 = arith.constant 2 : index
    %c0_57 = arith.constant 0 : index
    %74 = tpu.strided_load %arg14[%c2_56, %c0_57] {strides = array<i32: 2, 1>} : memref<74x8xf32, #tpu.memory_space<vmem>>, vector<36x8xf32>
    %c3_58 = arith.constant 3 : index
    %c0_59 = arith.constant 0 : index
    %75 = tpu.strided_load %arg14[%c3_58, %c0_59] {strides = array<i32: 2, 1>} : memref<74x8xf32, #tpu.memory_space<vmem>>, vector<36x8xf32>
    %c1_60 = arith.constant 1 : index
    %c0_61 = arith.constant 0 : index
    %76 = vector.load %arg14[%c1_60, %c0_61] : memref<74x8xf32, #tpu.memory_space<vmem>>, vector<9x8xf32>
    %c19_62 = arith.constant 19 : index
    %c0_63 = arith.constant 0 : index
    %77 = vector.load %arg14[%c19_62, %c0_63] : memref<74x8xf32, #tpu.memory_space<vmem>>, vector<9x8xf32>
    %c37_64 = arith.constant 37 : index
    %c0_65 = arith.constant 0 : index
    %78 = vector.load %arg14[%c37_64, %c0_65] : memref<74x8xf32, #tpu.memory_space<vmem>>, vector<9x8xf32>
    %c55_66 = arith.constant 55 : index
    %c0_67 = arith.constant 0 : index
    %79 = vector.load %arg14[%c55_66, %c0_67] : memref<74x8xf32, #tpu.memory_space<vmem>>, vector<9x8xf32>
    %80 = tpu.concatenate %76, %77, %78, %79 in 0 : vector<9x8xf32>, vector<9x8xf32>, vector<9x8xf32>, vector<9x8xf32> -> vector<36x8xf32>
    %81 = tpu.concatenate %72, %73, %74, %75, %80 in 1 : vector<36x8xf32>, vector<36x8xf32>, vector<36x8xf32>, vector<36x8xf32>, vector<36x8xf32> -> vector<36x40xf32>
    %c0_68 = arith.constant 0 : index
    %c0_69 = arith.constant 0 : index
    %82 = vector.load %arg5[%c0_68, %c0_69] : memref<40x32xbf16, #tpu.memory_space<vmem>>, vector<40x32xbf16>
    %c0_70 = arith.constant 0 : index
    %c0_71 = arith.constant 0 : index
    %83 = vector.load %arg6[%c0_70, %c0_71] : memref<1x32xf32, #tpu.memory_space<vmem>>, vector<1x32xf32>
    %84 = arith.truncf %81 : vector<36x40xf32> to vector<36x40xbf16>
    %cst_72 = arith.constant dense<0.000000e+00> : vector<36x32xf32>
    %85 = tpu.matmul %84, %82, %cst_72 {dimension_numbers = #tpu.dot_dimension_numbers<[1], [0], [0], [1], [0, 0, 1, 1], [], []>} : vector<36x40xbf16>, vector<40x32xbf16>, vector<36x32xf32> -> vector<36x32xf32>
    %86 = vector.extract_strided_slice %85 {offsets = [0, 0], sizes = [36, 16], strides = [1, 1]} : vector<36x32xf32> to vector<36x16xf32>
    %87 = vector.extract_strided_slice %83 {offsets = [0, 0], sizes = [1, 16], strides = [1, 1]} : vector<1x32xf32> to vector<1x16xf32>
    %88 = vector.broadcast %87 : vector<1x16xf32> to vector<36x16xf32>
    %89 = arith.addf %86, %88 : vector<36x16xf32>
    %cst_73 = arith.constant 2.500000e-01 : f32
    %90 = vector.broadcast %cst_73 : f32 to vector<36x16xf32>
    %91 = arith.mulf %90, %89 : vector<36x16xf32>
    %92 = arith.maximumf %89, %91 : vector<36x16xf32>
    %93 = vector.extract_strided_slice %85 {offsets = [0, 16], sizes = [36, 16], strides = [1, 1]} : vector<36x32xf32> to vector<36x16xf32>
    %94 = arith.addf %92, %93 : vector<36x16xf32>
    %95 = vector.extract_strided_slice %83 {offsets = [0, 16], sizes = [1, 16], strides = [1, 1]} : vector<1x32xf32> to vector<1x16xf32>
    %96 = vector.broadcast %95 : vector<1x16xf32> to vector<36x16xf32>
    %97 = arith.addf %94, %96 : vector<36x16xf32>
    %cst_74 = arith.constant 0.000000e+00 : f32
    %98 = vector.broadcast %cst_74 : f32 to vector<42x16xf32>
    %c0_75 = arith.constant 0 : index
    %c0_76 = arith.constant 0 : index
    %99 = vector.load %arg15[%c0_75, %c0_76] : memref<42x16xf32, #tpu.memory_space<vmem>>, vector<42x16xf32>
    tpu.vector_store %arg15[%c0_75, %c0_76], %98 {strides = array<i32>} : memref<42x16xf32, #tpu.memory_space<vmem>>, vector<42x16xf32>,
    %100 = vector.extract_strided_slice %97 {offsets = [0, 0], sizes = [8, 16], strides = [1, 1]} : vector<36x16xf32> to vector<8x16xf32>
    %c1_77 = arith.constant 1 : index
    %c0_78 = arith.constant 0 : index
    %101 = vector.load %arg15[%c1_77, %c0_78] : memref<42x16xf32, #tpu.memory_space<vmem>>, vector<8x16xf32>
    tpu.vector_store %arg15[%c1_77, %c0_78], %100 {strides = array<i32>} : memref<42x16xf32, #tpu.memory_space<vmem>>, vector<8x16xf32>,
    %102 = vector.extract_strided_slice %97 {offsets = [9, 0], sizes = [8, 16], strides = [1, 1]} : vector<36x16xf32> to vector<8x16xf32>
    %c11 = arith.constant 11 : index
    %c0_79 = arith.constant 0 : index
    %103 = vector.load %arg15[%c11, %c0_79] : memref<42x16xf32, #tpu.memory_space<vmem>>, vector<8x16xf32>
    tpu.vector_store %arg15[%c11, %c0_79], %102 {strides = array<i32>} : memref<42x16xf32, #tpu.memory_space<vmem>>, vector<8x16xf32>,
    %104 = vector.extract_strided_slice %97 {offsets = [18, 0], sizes = [8, 16], strides = [1, 1]} : vector<36x16xf32> to vector<8x16xf32>
    %c21 = arith.constant 21 : index
    %c0_80 = arith.constant 0 : index
    %105 = vector.load %arg15[%c21, %c0_80] : memref<42x16xf32, #tpu.memory_space<vmem>>, vector<8x16xf32>
    tpu.vector_store %arg15[%c21, %c0_80], %104 {strides = array<i32>} : memref<42x16xf32, #tpu.memory_space<vmem>>, vector<8x16xf32>,
    %106 = vector.extract_strided_slice %97 {offsets = [27, 0], sizes = [8, 16], strides = [1, 1]} : vector<36x16xf32> to vector<8x16xf32>
    %c31 = arith.constant 31 : index
    %c0_81 = arith.constant 0 : index
    %107 = vector.load %arg15[%c31, %c0_81] : memref<42x16xf32, #tpu.memory_space<vmem>>, vector<8x16xf32>
    tpu.vector_store %arg15[%c31, %c0_81], %106 {strides = array<i32>} : memref<42x16xf32, #tpu.memory_space<vmem>>, vector<8x16xf32>,
    %c0_82 = arith.constant 0 : index
    %c0_83 = arith.constant 0 : index
    %108 = tpu.strided_load %arg15[%c0_82, %c0_83] {strides = array<i32: 2, 1>} : memref<42x16xf32, #tpu.memory_space<vmem>>, vector<20x16xf32>
    %c1_84 = arith.constant 1 : index
    %c0_85 = arith.constant 0 : index
    %109 = tpu.strided_load %arg15[%c1_84, %c0_85] {strides = array<i32: 2, 1>} : memref<42x16xf32, #tpu.memory_space<vmem>>, vector<20x16xf32>
    %c2_86 = arith.constant 2 : index
    %c0_87 = arith.constant 0 : index
    %110 = tpu.strided_load %arg15[%c2_86, %c0_87] {strides = array<i32: 2, 1>} : memref<42x16xf32, #tpu.memory_space<vmem>>, vector<20x16xf32>
    %c3_88 = arith.constant 3 : index
    %c0_89 = arith.constant 0 : index
    %111 = tpu.strided_load %arg15[%c3_88, %c0_89] {strides = array<i32: 2, 1>} : memref<42x16xf32, #tpu.memory_space<vmem>>, vector<20x16xf32>
    %c1_90 = arith.constant 1 : index
    %c0_91 = arith.constant 0 : index
    %112 = vector.load %arg15[%c1_90, %c0_91] : memref<42x16xf32, #tpu.memory_space<vmem>>, vector<5x16xf32>
    %c11_92 = arith.constant 11 : index
    %c0_93 = arith.constant 0 : index
    %113 = vector.load %arg15[%c11_92, %c0_93] : memref<42x16xf32, #tpu.memory_space<vmem>>, vector<5x16xf32>
    %c21_94 = arith.constant 21 : index
    %c0_95 = arith.constant 0 : index
    %114 = vector.load %arg15[%c21_94, %c0_95] : memref<42x16xf32, #tpu.memory_space<vmem>>, vector<5x16xf32>
    %c31_96 = arith.constant 31 : index
    %c0_97 = arith.constant 0 : index
    %115 = vector.load %arg15[%c31_96, %c0_97] : memref<42x16xf32, #tpu.memory_space<vmem>>, vector<5x16xf32>
    %116 = tpu.concatenate %112, %113, %114, %115 in 0 : vector<5x16xf32>, vector<5x16xf32>, vector<5x16xf32>, vector<5x16xf32> -> vector<20x16xf32>
    %117 = tpu.concatenate %108, %109, %110, %111, %116 in 1 : vector<20x16xf32>, vector<20x16xf32>, vector<20x16xf32>, vector<20x16xf32>, vector<20x16xf32> -> vector<20x80xf32>
    %c0_98 = arith.constant 0 : index
    %c0_99 = arith.constant 0 : index
    %118 = vector.load %arg7[%c0_98, %c0_99] : memref<80x64xbf16, #tpu.memory_space<vmem>>, vector<80x64xbf16>
    %c0_100 = arith.constant 0 : index
    %c0_101 = arith.constant 0 : index
    %119 = vector.load %arg8[%c0_100, %c0_101] : memref<1x64xf32, #tpu.memory_space<vmem>>, vector<1x64xf32>
    %120 = arith.truncf %117 : vector<20x80xf32> to vector<20x80xbf16>
    %cst_102 = arith.constant dense<0.000000e+00> : vector<20x64xf32>
    %121 = tpu.matmul %120, %118, %cst_102 {dimension_numbers = #tpu.dot_dimension_numbers<[1], [0], [0], [1], [0, 0, 1, 1], [], []>} : vector<20x80xbf16>, vector<80x64xbf16>, vector<20x64xf32> -> vector<20x64xf32>
    %122 = vector.extract_strided_slice %121 {offsets = [0, 0], sizes = [20, 32], strides = [1, 1]} : vector<20x64xf32> to vector<20x32xf32>
    %123 = vector.extract_strided_slice %119 {offsets = [0, 0], sizes = [1, 32], strides = [1, 1]} : vector<1x64xf32> to vector<1x32xf32>
    %124 = vector.broadcast %123 : vector<1x32xf32> to vector<20x32xf32>
    %125 = arith.addf %122, %124 : vector<20x32xf32>
    %cst_103 = arith.constant 2.500000e-01 : f32
    %126 = vector.broadcast %cst_103 : f32 to vector<20x32xf32>
    %127 = arith.mulf %126, %125 : vector<20x32xf32>
    %128 = arith.maximumf %125, %127 : vector<20x32xf32>
    %129 = vector.extract_strided_slice %121 {offsets = [0, 32], sizes = [20, 32], strides = [1, 1]} : vector<20x64xf32> to vector<20x32xf32>
    %130 = arith.addf %128, %129 : vector<20x32xf32>
    %131 = vector.extract_strided_slice %119 {offsets = [0, 32], sizes = [1, 32], strides = [1, 1]} : vector<1x64xf32> to vector<1x32xf32>
    %132 = vector.broadcast %131 : vector<1x32xf32> to vector<20x32xf32>
    %133 = arith.addf %130, %132 : vector<20x32xf32>
    %134 = vector.extract_strided_slice %133 {offsets = [0, 0], sizes = [4, 32], strides = [1, 1]} : vector<20x32xf32> to vector<4x32xf32>
    %cst_104 = arith.constant dense<0.000000e+00> : vector<32xf32>
    %135 = vector.multi_reduction <add>, %134, %cst_104 [0] : vector<4x32xf32> to vector<32xf32>
    %136 = vector.shape_cast %135 : vector<32xf32> to vector<1x32xf32>
    %cst_105 = arith.constant 4.000000e+00 : f32
    %137 = vector.broadcast %cst_105 : f32 to vector<1x32xf32>
    %138 = arith.divf %136, %137 : vector<1x32xf32>
    %139 = vector.extract_strided_slice %133 {offsets = [5, 0], sizes = [4, 32], strides = [1, 1]} : vector<20x32xf32> to vector<4x32xf32>
    %cst_106 = arith.constant dense<0.000000e+00> : vector<32xf32>
    %140 = vector.multi_reduction <add>, %139, %cst_106 [0] : vector<4x32xf32> to vector<32xf32>
    %141 = vector.shape_cast %140 : vector<32xf32> to vector<1x32xf32>
    %cst_107 = arith.constant 4.000000e+00 : f32
    %142 = vector.broadcast %cst_107 : f32 to vector<1x32xf32>
    %143 = arith.divf %141, %142 : vector<1x32xf32>
    %144 = vector.extract_strided_slice %133 {offsets = [10, 0], sizes = [4, 32], strides = [1, 1]} : vector<20x32xf32> to vector<4x32xf32>
    %cst_108 = arith.constant dense<0.000000e+00> : vector<32xf32>
    %145 = vector.multi_reduction <add>, %144, %cst_108 [0] : vector<4x32xf32> to vector<32xf32>
    %146 = vector.shape_cast %145 : vector<32xf32> to vector<1x32xf32>
    %cst_109 = arith.constant 4.000000e+00 : f32
    %147 = vector.broadcast %cst_109 : f32 to vector<1x32xf32>
    %148 = arith.divf %146, %147 : vector<1x32xf32>
    %149 = vector.extract_strided_slice %133 {offsets = [15, 0], sizes = [4, 32], strides = [1, 1]} : vector<20x32xf32> to vector<4x32xf32>
    %cst_110 = arith.constant dense<0.000000e+00> : vector<32xf32>
    %150 = vector.multi_reduction <add>, %149, %cst_110 [0] : vector<4x32xf32> to vector<32xf32>
    %151 = vector.shape_cast %150 : vector<32xf32> to vector<1x32xf32>
    %cst_111 = arith.constant 4.000000e+00 : f32
    %152 = vector.broadcast %cst_111 : f32 to vector<1x32xf32>
    %153 = arith.divf %151, %152 : vector<1x32xf32>
    %154 = tpu.concatenate %138, %143, %148, %153 in 0 : vector<1x32xf32>, vector<1x32xf32>, vector<1x32xf32>, vector<1x32xf32> -> vector<4x32xf32>
    %155 = arith.truncf %154 : vector<4x32xf32> to vector<4x32xbf16>
    %c0_112 = arith.constant 0 : index
    %c0_113 = arith.constant 0 : index
    %156 = vector.load %arg9[%c0_112, %c0_113] : memref<32x50xbf16, #tpu.memory_space<vmem>>, vector<32x50xbf16>
    %cst_114 = arith.constant dense<0.000000e+00> : vector<4x50xf32>
    %157 = tpu.matmul %155, %156, %cst_114 {dimension_numbers = #tpu.dot_dimension_numbers<[1], [0], [0], [1], [0, 0, 1, 1], [], []>} : vector<4x32xbf16>, vector<32x50xbf16>, vector<4x50xf32> -> vector<4x50xf32>
    %158 = vector.shape_cast %157 : vector<4x50xf32> to vector<4x1x50xf32>
    %159 = vector.shape_cast %157 : vector<4x50xf32> to vector<1x4x50xf32>
    %160 = vector.broadcast %158 : vector<4x1x50xf32> to vector<4x4x50xf32>
    %161 = vector.broadcast %159 : vector<1x4x50xf32> to vector<4x4x50xf32>
    %162 = arith.subf %160, %161 : vector<4x4x50xf32>
    %163 = math.absf %162 : vector<4x4x50xf32>
    %164 = vector.extract_strided_slice %163 {offsets = [0, 0, 0], sizes = [4, 4, 10], strides = [1, 1, 1]} : vector<4x4x50xf32> to vector<4x4x10xf32>
    %165 = vector.extract_strided_slice %163 {offsets = [0, 0, 10], sizes = [4, 4, 10], strides = [1, 1, 1]} : vector<4x4x50xf32> to vector<4x4x10xf32>
    %166 = arith.addf %164, %165 : vector<4x4x10xf32>
    %167 = vector.extract_strided_slice %163 {offsets = [0, 0, 20], sizes = [4, 4, 10], strides = [1, 1, 1]} : vector<4x4x50xf32> to vector<4x4x10xf32>
    %168 = arith.addf %166, %167 : vector<4x4x10xf32>
    %169 = vector.extract_strided_slice %163 {offsets = [0, 0, 30], sizes = [4, 4, 10], strides = [1, 1, 1]} : vector<4x4x50xf32> to vector<4x4x10xf32>
    %170 = arith.addf %168, %169 : vector<4x4x10xf32>
    %171 = vector.extract_strided_slice %163 {offsets = [0, 0, 40], sizes = [4, 4, 10], strides = [1, 1, 1]} : vector<4x4x50xf32> to vector<4x4x10xf32>
    %172 = arith.addf %170, %171 : vector<4x4x10xf32>
    %cst_115 = arith.constant 0.000000e+00 : f32
    %173 = vector.broadcast %cst_115 : f32 to vector<4x4x10xf32>
    %174 = arith.subf %173, %172 : vector<4x4x10xf32>
    %175 = math.exp %174 : vector<4x4x10xf32>
    %cst_116 = arith.constant dense<0.000000e+00> : vector<4x10xf32>
    %176 = vector.multi_reduction <add>, %175, %cst_116 [0] : vector<4x4x10xf32> to vector<4x10xf32>
    %cst_117 = arith.constant 1.000000e+00 : f32
    %177 = vector.broadcast %cst_117 : f32 to vector<4x10xf32>
    %178 = arith.subf %176, %177 : vector<4x10xf32>
    %179 = tpu.concatenate %154, %178 in 1 : vector<4x32xf32>, vector<4x10xf32> -> vector<4x42xf32>
    %180 = arith.truncf %179 : vector<4x42xf32> to vector<4x42xbf16>
    %c0_118 = arith.constant 0 : index
    %c0_119 = arith.constant 0 : index
    %181 = vector.load %arg10[%c0_118, %c0_119] : memref<42x1xbf16, #tpu.memory_space<vmem>>, vector<42x1xbf16>
    %cst_120 = arith.constant dense<0.000000e+00> : vector<4x1xf32>
    %182 = tpu.matmul %180, %181, %cst_120 {dimension_numbers = #tpu.dot_dimension_numbers<[1], [0], [0], [1], [0, 0, 1, 1], [], []>} : vector<4x42xbf16>, vector<42x1xbf16>, vector<4x1xf32> -> vector<4x1xf32>
    %c0_121 = arith.constant 0 : index
    %c0_122 = arith.constant 0 : index
    %183 = vector.load %arg11[%c0_121, %c0_122] : memref<1x1xf32, #tpu.memory_space<vmem>>, vector<1x1xf32>
    %184 = vector.broadcast %183 : vector<1x1xf32> to vector<4x1xf32>
    %185 = arith.addf %182, %184 : vector<4x1xf32>
    %c0_123 = arith.constant 0 : index
    %c0_124 = arith.constant 0 : index
    %186 = vector.load %arg12[%c0_123, %c0_124] : memref<4x1xf32, #tpu.memory_space<vmem>>, vector<4x1xf32>
    tpu.vector_store %arg12[%c0_123, %c0_124], %185 {strides = array<i32>} : memref<4x1xf32, #tpu.memory_space<vmem>>, vector<4x1xf32>,
    return
  }
}

</mosaic_0001>

<bundles_post_ra>
// kernel: tpu_custom_call.1
= control target key start
LH: loop header
LB: loop body
LE: loop exit
PB: predicated region body
PF: predicated region fallthrough
CT: control target
= control target key end

     0   :  { %s2623_s29 = smov 2   ;;  %s2624_s30 = smov 6   ;;  %vm204_vm0 = vcmask 1040384   ;;  %vm221_vm1 = vcmask 1041408   ;;  %vm238_vm2 = vcmask 1042432   ;;  %vm631_vm3 = vcmask 1044480   ;;  %s3632_s0 = inlined_call_operand.vmem [shape: f32[266,2], index: 0, kind: input, shape index: {}]   ;;  %s3633_s2 = inlined_call_operand.vmem [shape: f32[1,8], index: 2, kind: input, shape index: {}]   ;;  %s3634_s1 = inlined_call_operand.vmem [shape: bf16[10,8], index: 1, kind: input, shape index: {}]   ;;  %s3635_s4 = inlined_call_operand.vmem [shape: f32[1,16], index: 4, kind: input, shape index: {}]   ;;  %s3636_s3 = inlined_call_operand.vmem [shape: bf16[20,16], index: 3, kind: input, shape index: {}]   ;;  %s3637_s5 = inlined_call_operand.vmem [shape: bf16[40,32], index: 5, kind: input, shape index: {}]   ;;  %s3638_s6 = inlined_call_operand.vmem [shape: f32[1,32], index: 6, kind: input, shape index: {}]   ;;  %s3639_s7 = inlined_call_operand.vmem [shape: bf16[80,64], index: 7, kind: input, shape index: {}]   ;;  %s3640_s8 = inlined_call_operand.vmem [shape: f32[1,64], index: 8, kind: input, shape index: {}]   ;;  %s3641_s9 = inlined_call_operand.vmem [shape: bf16[32,50], index: 9, kind: input, shape index: {}]   ;;  %s3642_s10 = inlined_call_operand.vmem [shape: bf16[42,1], index: 10, kind: input, shape index: {}]   ;;  %s3643_s11 = inlined_call_operand.<no memory space> [shape: f32[1,1], index: 11, kind: input, shape index: {}]   ;;  %s3644_s12 = inlined_call_operand.vmem [shape: f32[4,1], index: 12, kind: output, shape index: {}]  }
   0x1   :  { %v2144_v0 = vld [vmem:[%s3632_s0 + $0x1] ss:$2 sm:$0xff]  ;;  %v2145_v1 = vld [vmem:[%s3632_s0 + $0x11] ss:$2 sm:$0xff]  ;;  %v2161_v6 = vld [vmem:[%s3632_s0 + $0x2] ss:$2 sm:$0xff] }
   0x2   :  { %v2178_v2 = vld [vmem:[%s3632_s0 + $0x3] ss:$2 sm:$0xff]  ;;  %v2308_v3 = vpack.i.bf16 %v2145_v1, %v2144_v0  ;;  %v2179_v4 = vld [vmem:[%s3632_s0 + $0x13] ss:$2 sm:$0xff]  ;;  %v2162_v7 = vld [vmem:[%s3632_s0 + $0x12] ss:$2 sm:$0xff] }
   0x3   :  { %v2318_v5 = vpack.i.bf16 %v2179_v4, %v2178_v2  ;;  %v179_v8 = vld [vmem:[%s3632_s0 + $0x1] sm:$0xff]  ;;  %v180_v9 = vld [vmem:[%s3632_s0 + $0x9] sm:$0xff]  ;;  %v2147_v11 = vld [vmem:[%s3632_s0 + $0x31] ss:$2 sm:$0xff]  ;;  %v2313_v13 = vpack.i.bf16 %v2162_v7, %v2161_v6  ;;  %s2625_s13 = smov 4   ;;  %s2626_s14 = smov 8  }
   0x4   :  { %2309 = vrot.lane.b32.xlu0 %v2308_v3, %s2623_s29  ;;  %v2146_v10 = vld [vmem:[%s3632_s0 + $0x21] ss:$2 sm:$0xff]  ;;  %v2323_v14 = vpack.i.bf16 %v180_v9, %v179_v8  ;;  %v2163_v15 = vld [vmem:[%s3632_s0 + $0x22] ss:$2 sm:$0xff]  ;;  %v2164_v16 = vld [vmem:[%s3632_s0 + $0x32] ss:$2 sm:$0xff] }
   0x5   :  { %2319 = vrot.lane.b32.xlu1 %v2318_v5, %s2624_s30  ;;  %v2328_v12 = vpack.i.bf16 %v2147_v11, %v2146_v10  ;;  %v2180_v17 = vld [vmem:[%s3632_s0 + $0x23] ss:$2 sm:$0xff]  ;;  %v2181_v18 = vld [vmem:[%s3632_s0 + $0x33] ss:$2 sm:$0xff]  ;;  %v2333_v19 = vpack.i.bf16 %v2164_v16, %v2163_v15  ;;  %v2165_v27 = vld [vmem:[%s3632_s0 + $0x42] ss:$2 sm:$0xff] }
   0x6   :  { %v181_v20 = vld [vmem:[%s3632_s0 + $0x11] sm:$0xff]  ;;  %v182_v21 = vld [vmem:[%s3632_s0 + $0x19] sm:$0xff]  ;;  %v2338_v22 = vpack.i.bf16 %v2181_v18, %v2180_v17  ;;  %v2148_v24 = vld [vmem:[%s3632_s0 + $0x41] ss:$2 sm:$0xff]  ;;  %vm514_vm4 = vcmask 15360   ;;  %vm532_vm5 = vcmask 31744  }
   0x7   :  { %2329 = vrot.lane.b32.xlu2 %v2328_v12, %s2623_s29  ;;  %v2343_v23 = vpack.i.bf16 %v182_v21, %v181_v20  ;;  %v2149_v25 = vld [vmem:[%s3632_s0 + $0x51] ss:$2 sm:$0xff]  ;;  %v184_v26 = vld [vmem:[%s3632_s0 + $0x43] sm:$0xff]  ;;  %v2166_v28 = vld [vmem:[%s3632_s0 + $0x52] ss:$2 sm:$0xff]  ;;  %vm550_vm6 = vcmask 48128  }
   0x8   :  { %v185_v29 = vld [vmem:[%s3632_s0 + $0x4b] sm:$0xff]  ;;  %v2348_v30 = vpack.i.bf16 %v2149_v25, %v2148_v24  ;;  %v2183_v32 = vld [vmem:[%s3632_s0 + $0x53] ss:$2 sm:$0xff]  ;;  %v205_v33 = vrot.slane %v184_v26, 7  ;;  %v2353_v35 = vpack.i.bf16 %v2166_v28, %v2165_v27  ;;  %v188_v53 = vld [vmem:[%s3632_s0 + $0x63] sm:$0x1] }
   0x9   :  { %v2182_v31 = vld [vmem:[%s3632_s0 + $0x43] ss:$2 sm:$0xff]  ;;  %v183_v34 = vld [vmem:[%s3632_s0 + $0x21] sm:$0x1]  ;;  %v206_v36 = vrot.slane %v185_v29, 7  ;;  %v186_v45 = vld [vmem:[%s3632_s0 + $0x53] sm:$0xff] }
   0xa   :  { %v2358_v37 = vpack.i.bf16 %v2183_v32, %v2182_v31  ;;  %v249_v39 = vsel %vm204_vm0, %v183_v34, %v205_v33  ;;  %v2150_v40 = vld [vmem:[%s3632_s0 + $0x61] ss:$2 sm:$0xff]  ;;  %v2151_v41 = vld [vmem:[%s3632_s0 + $0x71] ss:$2 sm:$0xff]  ;;  %v2167_v42 = vld [vmem:[%s3632_s0 + $0x62] ss:$2 sm:$0xff] }
   0xb   :  { %v207_v38 = vsel %vm204_vm0, %v205_v33, %v206_v36  ;;  %v2168_v44 = vld [vmem:[%s3632_s0 + $0x72] ss:$2 sm:$0xff]  ;;  %v2368_v47 = vpack.i.bf16 %v2151_v41, %v2150_v40  ;;  %v208_v49 = vrot.slane %v186_v45, 7  ;;  %v2184_v51 = vld [vmem:[%s3632_s0 + $0x63] ss:$2 sm:$0xff]  ;;  %v212_v61 = vrot.slane %v188_v53, 7 }
   0xc   :  { %2314 = vrot.lane.b32.xlu0 %v2313_v13, %s2625_s13  ;;  %v2363_v43 = vpack.i.bf16 %v207_v38, %v249_v39  ;;  %v187_v46 = vld [vmem:[%s3632_s0 + $0x5b] sm:$0xff]  ;;  %v2373_v48 = vpack.i.bf16 %v2168_v44, %v2167_v42  ;;  %v189_v59 = vld [vmem:[%s3632_s0 + $0x85] sm:$0xff]  ;;  %v2840_v60 = vld [vmem:[%s3632_s0 + $0x8d] sm:$0xff]  ;;  %vm568_vm7 = vcmask 64512   ;;  %vm603_vm8 = vcmask 80896   ;;  %s2627_s23 = smov 124  }
   0xd   :  { %2324 = vrot.lane.b32.xlu1 %v2323_v14, %s2626_s14  ;;  %v210_v50 = vrot.slane %v187_v46, 7  ;;  %v2185_v52 = vld [vmem:[%s3632_s0 + $0x73] ss:$2 sm:$0xff]  ;;  %v209_v54 = vsel %vm204_vm0, %v206_v36, %v208_v49  ;;  %v222_v0 = vrot.slane %v189_v59, 6  ;;  %v223_v1 = vrot.slane %v2840_v60, 6  ;;  %v194_v16 = vld [vmem:[%s3632_s0 + $0xc7] sm:$0xff] }
   0xe   :  { %v2378_v56 = vpack.i.bf16 %v2185_v52, %v2184_v51  ;;  %v2152_v57 = vld [vmem:[%s3632_s0 + $0x81] ss:$2 sm:$0xff]  ;;  %v2153_v58 = vld [vmem:[%s3632_s0 + $0x91] ss:$2 sm:$0xff]  ;;  %v2169_v2 = vld [vmem:[%s3632_s0 + $0x82] ss:$2 sm:$0xff] }
   0xf   :  { %2334 = vrot.lane.b32.xlu2 %v2333_v19, %s2625_s13  ;;  %v211_v55 = vsel %vm204_vm0, %v208_v49, %v210_v50  ;;  %v2388_v63 = vpack.i.bf16 %v2153_v58, %v2152_v57  ;;  %v2170_v3 = vld [vmem:[%s3632_s0 + $0x92] ss:$2 sm:$0xff]  ;;  %v213_v4 = vsel %vm204_vm0, %v210_v50, %v212_v61  ;;  %v2186_v5 = vld [vmem:[%s3632_s0 + $0x83] ss:$2 sm:$0xff]  ;;  %v2187_v6 = vld [vmem:[%s3632_s0 + $0x93] ss:$2 sm:$0xff]  ;;  %v224_v8 = vsel %vm221_vm1, %v222_v0, %v223_v1 }
  0x10   :  { %v2383_v62 = vpack.i.bf16 %v211_v55, %v209_v54  ;;  %v2393_v7 = vpack.i.bf16 %v2170_v3, %v2169_v2  ;;  %v250_v9 = vsel %vm221_vm1, %v213_v4, %v222_v0  ;;  %v2398_v10 = vpack.i.bf16 %v2187_v6, %v2186_v5  ;;  %v192_v12 = vld [vmem:[%s3632_s0 + $0x9d] sm:$0xff]  ;;  %v193_v15 = vld [vmem:[%s3632_s0 + $0xa5] sm:$0x1]  ;;  %s2633_s18 = smov 24   ;;  %s2635_s26 = smov 48  }
  0x11   :  { %v2403_v11 = vpack.i.bf16 %v224_v8, %v250_v9  ;;  %v2156_v13 = vld [vmem:[%s3632_s0 + $0xc1] ss:$2 sm:$0xff]  ;;  %v2157_v14 = vld [vmem:[%s3632_s0 + $0xd1] ss:$2 sm:$0xff]  ;;  %v229_v17 = vrot.slane %v193_v15, 6  ;;  %v227_v20 = vrot.slane %v192_v12, 6 }
  0x12   :  { %v2173_v18 = vld [vmem:[%s3632_s0 + $0xc2] ss:$2 sm:$0xff]  ;;  %v2174_v19 = vld [vmem:[%s3632_s0 + $0xd2] ss:$2 sm:$0xff]  ;;  %v2408_v21 = vpack.i.bf16 %v2157_v14, %v2156_v13  ;;  %v2191_v24 = vld [vmem:[%s3632_s0 + $0xd3] ss:$2 sm:$0xff] }
  0x13   :  { %v239_v25 = vrot.slane %v194_v16, 5  ;;  %v230_v26 = vsel %vm221_vm1, %v227_v20, %v229_v17  ;;  %v2413_v27 = vpack.i.bf16 %v2174_v19, %v2173_v18  ;;  %v2154_v32 = vld [vmem:[%s3632_s0 + $0xa1] ss:$2 sm:$0xff]  ;;  %v2155_v33 = vld [vmem:[%s3632_s0 + $0xb1] ss:$2 sm:$0xff]  ;;  %vm870_vm9 = vcmask 31745  }
  0x14   :  { %2339 = vrot.lane.b32.xlu0 %v2338_v22, %s2624_s30  ;;  %v195_v22 = vld [vmem:[%s3632_s0 + $0xcf] sm:$0xff]  ;;  %v2428_v38 = vpack.i.bf16 %v2155_v33, %v2154_v32  ;;  %v2938_v49 = vld [vmem:[%s3632_s0 + $0xdf] sm:$0xff]  ;;  %vm864_vm10 = vcmask 25600   ;;  %vm875_vm11 = vcmask 24576   ;;  %vm877_vm12 = vcmask 31746   ;;  %s2637_s17 = smov 96  }
  0x15   :  { %2344 = vrot.lane.b32.xlu1 %v2343_v23, %s2626_s14  ;;  %v2190_v23 = vld [vmem:[%s3632_s0 + $0xc3] ss:$2 sm:$0xff]  ;;  %v240_v28 = vrot.slane %v195_v22, 5  ;;  %v251_v31 = vsel %vm238_vm2, %v230_v26, %v239_v25  ;;  %v2172_v36 = vld [vmem:[%s3632_s0 + $0xb2] ss:$2 sm:$0xff]  ;;  %v244_v53 = vrot.slane %v2938_v49, 5 }
  0x16   :  { %v2418_v29 = vpack.i.bf16 %v2191_v24, %v2190_v23  ;;  %v2188_v41 = vld [vmem:[%s3632_s0 + $0xa3] ss:$2 sm:$0xff]  ;;  %v2189_v42 = vld [vmem:[%s3632_s0 + $0xb3] ss:$2 sm:$0xff]  ;;  %v2175_v54 = vld [vmem:[%s3632_s0 + $0xe2] ss:$2 sm:$0xff] }
  0x17   :  { %2349 = vrot.lane.b32.xlu2 %v2348_v30, %s2623_s29  ;;  %v241_v30 = vsel %vm238_vm2, %v239_v25, %v240_v28  ;;  %v2438_v45 = vpack.i.bf16 %v2189_v42, %v2188_v41  ;;  %v2158_v46 = vld [vmem:[%s3632_s0 + $0xe1] ss:$2 sm:$0xff]  ;;  %v2176_v55 = vld [vmem:[%s3632_s0 + $0xf2] ss:$2 sm:$0xff]  ;;  %v2273_v0 = vld [vmem:[%s3634_s1] sm:$0x10] }
  0x18   :  { %v2423_v34 = vpack.i.bf16 %v241_v30, %v251_v31  ;;  %v2193_v57 = vld [vmem:[%s3632_s0 + $0xf3] ss:$2 sm:$0xff]  ;;  %v2453_v58 = vpack.i.bf16 %v2176_v55, %v2175_v54  ;;  %v2129_v32 = vld [vmem:[%s3632_s0 + $0x20] ss:$2 sm:$0xff]  ;;  %v2130_v33 = vld [vmem:[%s3632_s0 + $0x30] ss:$2 sm:$0xff] }
  0x19   :  { %vm883_vm13 = vcmask 31747   ;;  %vm1173_vm14 = vcmask 130048   ;;  %vm1163_vm15 = vcmask 97280   ;;  %s2640_s20 = smov 98   ;;  %s2642_s21 = smov 108  }
  0x1c   :  { %2354 = vrot.lane.b32.xlu0 %v2353_v35, %s2625_s13  ;;  %v2171_v35 = vld [vmem:[%s3632_s0 + $0xa2] ss:$2 sm:$0xff] }
  0x1d   :  { %2359 = vrot.lane.b32.xlu1 %v2358_v37, %s2624_s30  ;;  %v191_v37 = vld [vmem:[%s3632_s0 + $0x95] sm:$0xff]  ;;  %v2433_v39 = vpack.i.bf16 %v2172_v36, %v2171_v35 }
  0x1e   :  { %v225_v40 = vrot.slane %v191_v37, 6 }
  0x1f   :  { %2364 = vrot.lane.b32.xlu2 %v2363_v43, %s2626_s14 }
  0x20   :  { %v226_v43 = vsel %vm221_vm1, %v223_v1, %v225_v40  ;;  %v228_v44 = vsel %vm221_vm1, %v225_v40, %v227_v20 }
  0x21   :  { %v2443_v50 = vpack.i.bf16 %v228_v44, %v226_v43 }
  0x24   :  { %2369 = vrot.lane.b32.xlu0 %v2368_v47, %s2623_s29  ;;  %v2159_v47 = vld [vmem:[%s3632_s0 + $0xf1] ss:$2 sm:$0xff] }
  0x25   :  { %2374 = vrot.lane.b32.xlu1 %v2373_v48, %s2625_s13  ;;  %v196_v48 = vld [vmem:[%s3632_s0 + $0xd7] sm:$0xff]  ;;  %v2448_v51 = vpack.i.bf16 %v2159_v47, %v2158_v46 }
  0x26   :  { %v242_v52 = vrot.slane %v196_v48, 5 }
  0x27   :  { %2379 = vrot.lane.b32.xlu2 %v2378_v56, %s2624_s30  ;;  %v2192_v56 = vld [vmem:[%s3632_s0 + $0xe3] ss:$2 sm:$0xff] }
  0x28   :  { %v243_v59 = vsel %vm238_vm2, %v240_v28, %v242_v52  ;;  %v245_v60 = vsel %vm238_vm2, %v242_v52, %v244_v53  ;;  %v2458_v61 = vpack.i.bf16 %v2193_v57, %v2192_v56 }
  0x2c   :  { %2384 = vrot.lane.b32.xlu0 %v2383_v62, %s2626_s14  ;;  %v2463_v62 = vpack.i.bf16 %v245_v60, %v243_v59  ;;  %v2132_v59 = vld [vmem:[%s3632_s0 + $0x50] ss:$2 sm:$0xff] }
  0x2d   :  { %2389 = vrot.lane.b32.xlu1 %v2388_v63, %s2623_s29  ;;  %v2197_v63 = vld [vmem:[%s3634_s1] sm:$0xf] }
  0x2e   :  { %v2198_v1 = vor.u32 %v2273_v0, %v2197_v63 }
  0x2f   :  { %2394 = vrot.lane.b32.xlu2 %v2393_v7, %s2625_s13 }
  0x30   :  { %v633_v2 = vsel %vm631_vm3, %v2198_v1, 0 }
  0x31   :  { %642 = vmatpush.bf16.msra.mxu0 %v633_v2  ;;  %2287 = vmatpush.bf16.msra.mxu3 %v633_v2 }
  0x34   :  { %2399 = vrot.lane.b32.xlu0 %v2398_v10, %s2624_s30  ;;  %v44_v10 = vld [vmem:[%s3632_s0] ss:$2 sm:$0xff] }
  0x35   :  { %2404 = vrot.lane.b32.xlu1 %v2403_v11, %s2626_s14  ;;  %v2128_v11 = vld [vmem:[%s3632_s0 + $0x10] ss:$2 sm:$0xff] }
  0x37   :  { %2409 = vrot.lane.b32.xlu2 %v2408_v21, %s2623_s29 }
  0x3c   :  { %2414 = vrot.lane.b32.xlu0 %v2413_v27, %s2625_s13 }
  0x3d   :  { %2419 = vrot.lane.b32.xlu1 %v2418_v29, %s2624_s30 }
  0x3f   :  { %2424 = vrot.lane.b32.xlu2 %v2423_v34, %s2626_s14 }
  0x44   :  { %2429 = vrot.lane.b32.xlu0 %v2428_v38, %s2623_s29 }
  0x45   :  { %2434 = vrot.lane.b32.xlu1 %v2433_v39, %s2625_s13 }
  0x47   :  { %2439 = vrot.lane.b32.xlu2 %v2438_v45, %s2624_s30 }
  0x4c   :  { %2444 = vrot.lane.b32.xlu0 %v2443_v50, %s2626_s14 }
  0x4d   :  { %2449 = vrot.lane.b32.xlu1 %v2448_v51, %s2623_s29 }
  0x4f   :  { %2454 = vrot.lane.b32.xlu2 %v2453_v58, %s2625_s13  ;;  %v2131_v58 = vld [vmem:[%s3632_s0 + $0x40] ss:$2 sm:$0xff] }
  0x54   :  { %2459 = vrot.lane.b32.xlu0 %v2458_v61, %s2624_s30 }
  0x55   :  { %2464 = vrot.lane.b32.xlu1 %v2463_v62, %s2626_s14 }
  0x61   :  { %v2330_v3 = vpop.permute.xlu2 %2329 }
  0x62   :  { %v2332_v28 = vunpack.i.h.bf16 %v2330_v3  ;;  %v2331_v29 = vunpack.i.l.bf16 %v2330_v3 }
  0x64   :  { %v517_v38 = vsel %vm514_vm4, %v2129_v32, %v2331_v29  ;;  %v518_v39 = vsel %vm514_vm4, %v2130_v33, %v2332_v28 }
  0x69   :  { %v2335_v4 = vpop.permute.xlu2 %2334 }
  0x6a   :  { %v2337_v35 = vunpack.i.h.bf16 %v2335_v4  ;;  %v2336_v36 = vunpack.i.l.bf16 %v2335_v4 }
  0x6c   :  { %v535_v42 = vsel %vm532_vm5, %v517_v38, %v2336_v36  ;;  %v536_v43 = vsel %vm532_vm5, %v518_v39, %v2337_v35  ;;  %v2139_v35 = vld [vmem:[%s3632_s0 + $0xc0] ss:$2 sm:$0xff]  ;;  %v2140_v36 = vld [vmem:[%s3632_s0 + $0xd0] ss:$2 sm:$0xff] }
  0x71   :  { %v2970_v7 = vpop.permute.xlu2 %2349 }
  0x72   :  { %v2352_v55 = vunpack.i.h.bf16 %v2970_v7  ;;  %v2351_v56 = vunpack.i.l.bf16 %v2970_v7 }
  0x74   :  { %v519_v0 = vsel %vm514_vm4, %v2131_v58, %v2351_v56  ;;  %v520_v1 = vsel %vm514_vm4, %v2132_v59, %v2352_v55 }
  0x76   :  { %v2310_v5 = vpop.permute.xlu0 %2309 }
  0x77   :  { %v2320_v6 = vpop.permute.xlu1 %2319  ;;  %v2312_v8 = vunpack.i.h.bf16 %v2310_v5  ;;  %v2311_v9 = vunpack.i.l.bf16 %v2310_v5 }
  0x78   :  { %v2322_v13 = vunpack.i.h.bf16 %v2320_v6  ;;  %v2321_v14 = vunpack.i.l.bf16 %v2320_v6 }
  0x79   :  { %v515_v18 = vsel %vm514_vm4, %v44_v10, %v2311_v9  ;;  %v516_v19 = vsel %vm514_vm4, %v2128_v11, %v2312_v8  ;;  %v2365_v31 = vpop.permute.xlu2 %2364 }
  0x7a   :  { %v2367_v7 = vunpack.i.h.bf16 %v2365_v31  ;;  %v2366_v8 = vunpack.i.l.bf16 %v2365_v31 }
  0x7e   :  { %v2315_v12 = vpop.permute.xlu0 %2314 }
  0x7f   :  { %v2317_v15 = vunpack.i.h.bf16 %v2315_v12  ;;  %v2316_v16 = vunpack.i.l.bf16 %v2315_v12  ;;  %v2325_v17 = vpop.permute.xlu1 %2324  ;;  %v2177_v12 = vld [vmem:[%s3632_s0 + $0x102] ss:$2 sm:$0xf] }
  0x80   :  { %v2327_v20 = vunpack.i.h.bf16 %v2325_v17  ;;  %v2326_v21 = vunpack.i.l.bf16 %v2325_v17  ;;  %369 = vrot.lane.b32.xlu0 %v2177_v12, %s2625_s13 }
  0x81   :  { %v533_v22 = vsel %vm532_vm5, %v515_v18, %v2316_v16  ;;  %v534_v23 = vsel %vm532_vm5, %v516_v19, %v2317_v15  ;;  %v2380_v50 = vpop.permute.xlu2 %2379 }
  0x82   :  { %v551_v24 = vsel %vm550_vm6, %v533_v22, %v2321_v14  ;;  %v552_v25 = vsel %vm550_vm6, %v534_v23, %v2322_v13  ;;  %v2194_v14 = vld [vmem:[%s3632_s0 + $0x103] ss:$2 sm:$0xf]  ;;  %v2134_v22 = vld [vmem:[%s3632_s0 + $0x70] ss:$2 sm:$0xff]  ;;  %v2382_v29 = vunpack.i.h.bf16 %v2380_v50 }
  0x83   :  { %v569_v26 = vsel %vm568_vm7, %v551_v24, %v2326_v21  ;;  %v570_v27 = vsel %vm568_vm7, %v552_v25, %v2327_v20  ;;  %437 = vrot.lane.b32.xlu1 %v2194_v14, %s2624_s30  ;;  %v2133_v21 = vld [vmem:[%s3632_s0 + $0x60] ss:$2 sm:$0xff]  ;;  %s2641_s30 = smov 118  }
  0x84   :  { %v589_v30 = vpack.c.bf16 %v570_v27, %v569_v26 }
  0x86   :  { %v2340_v34 = vpop.permute.xlu0 %2339  ;;  %2199 = vmatmul.msk.bf16.vlgmr.msra.gmra.mxu0 %vm603_vm8, %v589_v30  ;;  %v2381_v30 = vunpack.i.l.bf16 %v2380_v50 }
  0x87   :  { %v2345_v37 = vpop.permute.xlu1 %2344  ;;  %v2342_v40 = vunpack.i.h.bf16 %v2340_v34  ;;  %v2341_v41 = vunpack.i.l.bf16 %v2340_v34 }
  0x88   :  { %v2347_v44 = vunpack.i.h.bf16 %v2345_v37  ;;  %v2346_v45 = vunpack.i.l.bf16 %v2345_v37 }
  0x89   :  { %v553_v46 = vsel %vm550_vm6, %v535_v42, %v2341_v41  ;;  %v554_v47 = vsel %vm550_vm6, %v536_v43, %v2342_v40  ;;  %v3012_v2 = vpop.permute.xlu2 %2394  ;;  %v2160_v40 = vld [vmem:[%s3632_s0 + $0x101] ss:$2 sm:$0xf] }
  0x8a   :  { %v571_v52 = vsel %vm568_vm7, %v553_v46, %v2346_v45  ;;  %v572_v54 = vsel %vm568_vm7, %v554_v47, %v2347_v44  ;;  %301 = vrot.lane.b32.xlu2 %v2160_v40, %s2623_s29 }
  0x8b   :  { %v590_v57 = vpack.c.bf16 %v572_v54, %v571_v52 }
  0x8e   :  { %v2355_v48 = vpop.permute.xlu0 %2354 }
  0x8f   :  { %v2360_v51 = vpop.permute.xlu1 %2359  ;;  %v2357_v61 = vunpack.i.h.bf16 %v2355_v48  ;;  %v2356_v62 = vunpack.i.l.bf16 %v2355_v48 }
  0x90   :  { %v2362_v3 = vunpack.i.h.bf16 %v2360_v51  ;;  %v2361_v4 = vunpack.i.l.bf16 %v2360_v51 }
  0x91   :  { %v537_v5 = vsel %vm532_vm5, %v519_v0, %v2356_v62  ;;  %v538_v6 = vsel %vm532_vm5, %v520_v1, %v2357_v61  ;;  %v2410_v17 = vpop.permute.xlu2 %2409 }
  0x92   :  { %v555_v9 = vsel %vm550_vm6, %v537_v5, %v2361_v4  ;;  %v556_v10 = vsel %vm550_vm6, %v538_v6, %v2362_v3  ;;  %v2412_v31 = vunpack.i.h.bf16 %v2410_v17  ;;  %v2411_v32 = vunpack.i.l.bf16 %v2410_v17  ;;  %v2135_v4 = vld [vmem:[%s3632_s0 + $0x80] ss:$2 sm:$0xff]  ;;  %v2136_v5 = vld [vmem:[%s3632_s0 + $0x90] ss:$2 sm:$0xff] }
  0x93   :  { %v573_v15 = vsel %vm568_vm7, %v555_v9, %v2366_v8  ;;  %v574_v16 = vsel %vm568_vm7, %v556_v10, %v2367_v7  ;;  %v198_v7 = vld [vmem:[%s3632_s0 + $0xe7] sm:$0x1]  ;;  %v2397_v10 = vunpack.i.h.bf16 %v3012_v2 }
  0x94   :  { %v591_v20 = vpack.c.bf16 %v574_v16, %v573_v15  ;;  %v527_v43 = vsel %vm514_vm4, %v2139_v35, %v2411_v32  ;;  %v528_v44 = vsel %vm514_vm4, %v2140_v36, %v2412_v31  ;;  %v246_v9 = vrot.slane %v198_v7, 5 }
  0x96   :  { %v2370_v60 = vpop.permute.xlu0 %2369  ;;  %2200 = vmatmul.msk.bf16.gmra.mxu0 %vm603_vm8, %v590_v57  ;;  %v247_v15 = vsel %vm238_vm2, %v244_v53, %v246_v9  ;;  %v2143_v9 = vld [vmem:[%s3632_s0 + $0x100] ss:$2 sm:$0xf] }
  0x97   :  { %v2375_v63 = vpop.permute.xlu1 %2374  ;;  %v2372_v18 = vunpack.i.h.bf16 %v2370_v60  ;;  %v2371_v19 = vunpack.i.l.bf16 %v2370_v60  ;;  %495 = vrot.lane.b32.xlu2 %v247_v15, %s2626_s14 }
  0x98   :  { %v2377_v24 = vunpack.i.h.bf16 %v2375_v63  ;;  %v2376_v25 = vunpack.i.l.bf16 %v2375_v63 }
  0x99   :  { %v521_v27 = vsel %vm514_vm4, %v2133_v21, %v2371_v19  ;;  %v522_v28 = vsel %vm514_vm4, %v2134_v22, %v2372_v18  ;;  %v2425_v37 = vpop.permute.xlu2 %2424 }
  0x9a   :  { %v539_v33 = vsel %vm532_vm5, %v521_v27, %v2376_v25  ;;  %v540_v34 = vsel %vm532_vm5, %v522_v28, %v2377_v24  ;;  %v2427_v50 = vunpack.i.h.bf16 %v2425_v37  ;;  %v2426_v51 = vunpack.i.l.bf16 %v2425_v37  ;;  %v2142_v28 = vld [vmem:[%s3632_s0 + $0xf0] ss:$2 sm:$0xff]  ;;  %v2137_v37 = vld [vmem:[%s3632_s0 + $0xa0] ss:$2 sm:$0xff] }
  0x9b   :  { %v557_v41 = vsel %vm550_vm6, %v539_v33, %v2381_v30  ;;  %v558_v42 = vsel %vm550_vm6, %v540_v34, %v2382_v29 }
  0x9e   :  { %v2385_v11 = vpop.permute.xlu0 %2384 }
  0x9f   :  { %v3021_v13 = vpop.permute.xlu1 %2389  ;;  %v2387_v38 = vunpack.i.h.bf16 %v2385_v11  ;;  %v2386_v39 = vunpack.i.l.bf16 %v2385_v11  ;;  %v2396_v11 = vunpack.i.l.bf16 %v3012_v2 }
  0xa0   :  { %v2392_v63 = vunpack.i.h.bf16 %v3021_v13  ;;  %v2391_v0 = vunpack.i.l.bf16 %v3021_v13 }
  0xa1   :  { %v575_v57 = vsel %vm568_vm7, %v557_v41, %v2386_v39  ;;  %v576_v58 = vsel %vm568_vm7, %v558_v42, %v2387_v38  ;;  %v3075_v6 = vpop.permute.xlu2 %2439  ;;  %v2138_v38 = vld [vmem:[%s3632_s0 + $0xb0] ss:$2 sm:$0xff] }
  0xa2   :  { %v592_v1 = vpack.c.bf16 %v576_v58, %v575_v57  ;;  %v523_v13 = vsel %vm514_vm4, %v2135_v4, %v2391_v0  ;;  %v524_v14 = vsel %vm514_vm4, %v2136_v5, %v2392_v63 }
  0xa3   :  { %v541_v18 = vsel %vm532_vm5, %v523_v13, %v2396_v11  ;;  %v542_v19 = vsel %vm532_vm5, %v524_v14, %v2397_v10 }
  0xa6   :  { %v3036_v23 = vpop.permute.xlu0 %2399  ;;  %2201 = vmatmul.msk.bf16.gmra.mxu0 %vm603_vm8, %v591_v20 }
  0xa7   :  { %v3039_v26 = vpop.permute.xlu1 %2404  ;;  %v2402_v16 = vunpack.i.h.bf16 %v3036_v23  ;;  %v2401_v17 = vunpack.i.l.bf16 %v3036_v23  ;;  %v2141_v23 = vld [vmem:[%s3632_s0 + $0xe0] ss:$2 sm:$0xff]  ;;  %s2629_s0 = smov 12  }
  0xa8   :  { %v2407_v2 = vunpack.i.h.bf16 %v3039_v26  ;;  %v2406_v20 = vunpack.i.l.bf16 %v3039_v26 }
  0xa9   :  { %v559_v21 = vsel %vm550_vm6, %v541_v18, %v2401_v17  ;;  %v560_v49 = vsel %vm550_vm6, %v542_v19, %v2402_v16  ;;  %v2455_v24 = vpop.permute.xlu2 %2454 }
  0xaa   :  { %v577_v29 = vsel %vm568_vm7, %v559_v21, %v2406_v20  ;;  %v578_v26 = vsel %vm568_vm7, %v560_v49, %v2407_v2  ;;  %v2457_v30 = vunpack.i.h.bf16 %v2455_v24  ;;  %v2456_v31 = vunpack.i.l.bf16 %v2455_v24 }
  0xab   :  { %v593_v36 = vpack.c.bf16 %v578_v26, %v577_v29 }
  0xae   :  { %v2415_v45 = vpop.permute.xlu0 %2414 }
  0xaf   :  { %v2417_v46 = vunpack.i.h.bf16 %v2415_v45  ;;  %v2416_v47 = vunpack.i.l.bf16 %v2415_v45  ;;  %v2420_v48 = vpop.permute.xlu1 %2419 }
  0xb0   :  { %v2422_v52 = vunpack.i.h.bf16 %v2420_v48  ;;  %v2421_v54 = vunpack.i.l.bf16 %v2420_v48 }
  0xb1   :  { %v545_v55 = vsel %vm532_vm5, %v527_v43, %v2416_v47  ;;  %v546_v56 = vsel %vm532_vm5, %v528_v44, %v2417_v46 }
  0xb2   :  { %v563_v59 = vsel %vm550_vm6, %v545_v55, %v2421_v54  ;;  %v564_v60 = vsel %vm550_vm6, %v546_v56, %v2422_v52  ;;  %v2442_v55 = vunpack.i.h.bf16 %v3075_v6  ;;  %v2441_v56 = vunpack.i.l.bf16 %v3075_v6 }
  0xb3   :  { %v581_v61 = vsel %vm568_vm7, %v563_v59, %v2426_v51  ;;  %v582_v62 = vsel %vm568_vm7, %v564_v60, %v2427_v50 }
  0xb4   :  { %v595_v3 = vpack.c.bf16 %v582_v62, %v581_v61 }
  0xb6   :  { %v2430_v8 = vpop.permute.xlu0 %2429  ;;  %2202 = vmatmul.msk.bf16.gmra.mxu0 %vm603_vm8, %v592_v1  ;;  %2205 = vmatmul.msk.bf16.vlgmr.msra.gmra.mxu3 %vm603_vm8, %v595_v3 }
  0xb7   :  { %v2435_v12 = vpop.permute.xlu1 %2434  ;;  %v2432_v34 = vunpack.i.h.bf16 %v2430_v8  ;;  %v2431_v35 = vunpack.i.l.bf16 %v2430_v8 }
  0xb8   :  { %v2437_v42 = vunpack.i.h.bf16 %v2435_v12  ;;  %v2436_v43 = vunpack.i.l.bf16 %v2435_v12  ;;  %v3148_v12 = vld [vmem:[%s3633_s2] ss:$0 sm:$0xff]  ;;  %s2630_s2 = smov 16  }
  0xb9   :  { %v525_v47 = vsel %vm514_vm4, %v2137_v37, %v2431_v35  ;;  %v526_v48 = vsel %vm514_vm4, %v2138_v38, %v2432_v34 }
  0xba   :  { %v543_v59 = vsel %vm532_vm5, %v525_v47, %v2436_v43  ;;  %v544_v60 = vsel %vm532_vm5, %v526_v48, %v2437_v42 }
  0xbb   :  { %v561_v0 = vsel %vm550_vm6, %v543_v59, %v2441_v56  ;;  %v562_v1 = vsel %vm550_vm6, %v544_v60, %v2442_v55 }
  0xbe   :  { %v2445_v22 = vpop.permute.xlu0 %2444 }
  0xbf   :  { %v2450_v53 = vpop.permute.xlu1 %2449  ;;  %v2447_v62 = vunpack.i.h.bf16 %v2445_v22  ;;  %v2446_v63 = vunpack.i.l.bf16 %v2445_v22 }
  0xc0   :  { %v2452_v25 = vunpack.i.h.bf16 %v2450_v53  ;;  %v2451_v27 = vunpack.i.l.bf16 %v2450_v53 }
  0xc1   :  { %v579_v3 = vsel %vm568_vm7, %v561_v0, %v2446_v63  ;;  %v580_v4 = vsel %vm568_vm7, %v562_v1, %v2447_v62 }
  0xc2   :  { %v529_v32 = vsel %vm514_vm4, %v2141_v23, %v2451_v27  ;;  %v530_v33 = vsel %vm514_vm4, %v2142_v28, %v2452_v25  ;;  %v594_v5 = vpack.c.bf16 %v580_v4, %v579_v3 }
  0xc3   :  { %v547_v39 = vsel %vm532_vm5, %v529_v32, %v2456_v31  ;;  %v548_v40 = vsel %vm532_vm5, %v530_v33, %v2457_v30  ;;  %v2628_v30 = vmov 0.0  }
  0xc4   :  { %847 = vst.msk [vmem:[#allocation2] sm:$0xff] %vm532_vm5, %v2628_v30 }
  0xc5   :  { %848 = vst.msk [vmem:[#allocation2 + $0x8] sm:$0xff] %vm532_vm5, %v2628_v30 }
  0xc6   :  { %v2460_v41 = vpop.permute.xlu0 %2459  ;;  %2203 = vmatmul.msk.bf16.gmra.mxu0 %vm603_vm8, %v593_v36  ;;  %849 = vst.msk [vmem:[#allocation2 + $0x10] sm:$0xff] %vm532_vm5, %v2628_v30 }
  0xc7   :  { %v2462_v44 = vunpack.i.h.bf16 %v2460_v41  ;;  %v2461_v45 = vunpack.i.l.bf16 %v2460_v41  ;;  %v2465_v46 = vpop.permute.xlu1 %2464  ;;  %850 = vst.msk [vmem:[#allocation2 + $0x18] sm:$0xff] %vm532_vm5, %v2628_v30 }
  0xc8   :  { %v2467_v50 = vunpack.i.h.bf16 %v2465_v46  ;;  %v2466_v51 = vunpack.i.l.bf16 %v2465_v46  ;;  %851 = vst.msk [vmem:[#allocation2 + $0x20] sm:$0xff] %vm532_vm5, %v2628_v30 }
  0xc9   :  { %v565_v52 = vsel %vm550_vm6, %v547_v39, %v2461_v45  ;;  %v566_v54 = vsel %vm550_vm6, %v548_v40, %v2462_v44  ;;  %852 = vst.msk [vmem:[#allocation2 + $0x28] sm:$0xff] %vm532_vm5, %v2628_v30 }
  0xca   :  { %v583_v57 = vsel %vm568_vm7, %v565_v52, %v2466_v51  ;;  %v584_v58 = vsel %vm568_vm7, %v566_v54, %v2467_v50  ;;  %853 = vst.msk [vmem:[#allocation2 + $0x30] sm:$0xff] %vm532_vm5, %v2628_v30 }
  0xcb   :  { %v596_v61 = vpack.c.bf16 %v584_v58, %v583_v57  ;;  %854 = vst.msk [vmem:[#allocation2 + $0x38] sm:$0xff] %vm532_vm5, %v2628_v30 }
  0xcc   :  { %855 = vst.msk [vmem:[#allocation2 + $0x40] sm:$0xff] %vm532_vm5, %v2628_v30 }
  0xcd   :  { %2206 = vmatmul.msk.bf16.gmra.mxu3 %vm603_vm8, %v596_v61  ;;  %856 = vst.msk [vmem:[#allocation2 + $0x48] sm:$0xff] %vm532_vm5, %v2628_v30 }
  0xce   :  { %857 = vst.msk [vmem:[#allocation2 + $0x50] sm:$0xff] %vm532_vm5, %v2628_v30 }
  0xcf   :  { %858 = vst.msk [vmem:[#allocation2 + $0x58] sm:$0xff] %vm532_vm5, %v2628_v30 }
  0xd0   :  { %859 = vst.msk [vmem:[#allocation2 + $0x60] sm:$0xff] %vm532_vm5, %v2628_v30 }
  0xd1   :  { %860 = vst.msk [vmem:[#allocation2 + $0x68] sm:$0xff] %vm532_vm5, %v2628_v30 }
  0xd2   :  { %861 = vst.msk [vmem:[#allocation2 + $0x70] sm:$0xff] %vm532_vm5, %v2628_v30 }
  0xd3   :  { %862 = vst.msk [vmem:[#allocation2 + $0x78] sm:$0xff] %vm532_vm5, %v2628_v30 }
  0xd4   :  { %863 = vst.msk [vmem:[#allocation2 + $0x80] sm:$0xff] %vm532_vm5, %v2628_v30 }
  0xd5   :  { %1340 = vst.msk [vmem:[#allocation3] sm:$0xff] %vm568_vm7, %v2628_v30 }
  0xd6   :  { %2204 = vmatmul.msk.bf16.gmra.mxu0 %vm603_vm8, %v594_v5  ;;  %1341 = vst.msk [vmem:[#allocation3 + $0x8] sm:$0xff] %vm568_vm7, %v2628_v30 }
  0xd7   :  { %1342 = vst.msk [vmem:[#allocation3 + $0x10] sm:$0xff] %vm568_vm7, %v2628_v30 }
  0xd8   :  { %1343 = vst.msk [vmem:[#allocation3 + $0x18] sm:$0xff] %vm568_vm7, %v2628_v30 }
  0xd9   :  { %1344 = vst.msk [vmem:[#allocation3 + $0x20] sm:$0xff] %vm568_vm7, %v2628_v30 }
  0xda   :  { %1345 = vst.msk [vmem:[#allocation3 + $0x28] sm:$0xff] %vm568_vm7, %v2628_v30 }
  0xdb   :  { %1346 = vst.msk [vmem:[#allocation3 + $0x30] sm:$0xff] %vm568_vm7, %v2628_v30 }
  0xdc   :  { %1347 = vst.msk [vmem:[#allocation3 + $0x38] sm:$0xff] %vm568_vm7, %v2628_v30 }
  0xdd   :  { %1348 = vst.msk [vmem:[#allocation3 + $0x40] sm:$0xff] %vm568_vm7, %v2628_v30 }
  0xde   :  { %865 = vst.msk [vmem:[#allocation2 + $0x88] sm:$0x3] %vm864_vm10, %v2628_v30 }
  0xdf   :  { %1650 = vst.msk [vmem:[#allocation4] sm:$0xff] %vm1173_vm14, %v2628_v30 }
  0xe0   :  { %1651 = vst.msk [vmem:[#allocation4 + $0x8] sm:$0xff] %vm1173_vm14, %v2628_v30 }
  0xe1   :  { %1652 = vst.msk [vmem:[#allocation4 + $0x10] sm:$0xff] %vm1173_vm14, %v2628_v30 }
  0xe2   :  { %1653 = vst.msk [vmem:[#allocation4 + $0x18] sm:$0xff] %vm1173_vm14, %v2628_v30 }
  0xe3   :  { %1654 = vst.msk [vmem:[#allocation4 + $0x20] sm:$0xff] %vm1173_vm14, %v2628_v30 }
  0xe4   :  { %v302_v7 = vpop.permute.xlu2 %301 }
  0xe5   :  { %v531_v10 = vsel %vm514_vm4, %v2143_v9, %v302_v7  ;;  %vm1201_vm4 = vcmask 162816  }
  0xf1   :  { %v496_v17 = vpop.permute.xlu2 %495 }
  0xf2   :  { %v370_v11 = vpop.permute.xlu0 %369 }
  0xf3   :  { %v549_v13 = vsel %vm532_vm5, %v531_v10, %v370_v11 }
  0xf5   :  { %v438_v14 = vpop.permute.xlu1 %437 }
  0xf6   :  { %v567_v16 = vsel %vm550_vm6, %v549_v13, %v438_v14  ;;  %vm888_vm6 = vcmask 26624  }
  0xf7   :  { %v585_v18 = vsel %vm568_vm7, %v567_v16, %v496_v17 }
  0xf8   :  { %v597_v19 = vpack.c.bf16 %v585_v18, %v585_v18 }
  0xfa   :  { %2207 = vmatmul.msk.bf16.gmra.mxu3 %vm603_vm8, %v597_v19  ;;  %vm1349_vm8 = vcmask 58368  }
  0xfb   :  { %1350 = vst.msk [vmem:[#allocation3 + $0x48] sm:$0x3] %vm1349_vm8, %v2628_v30 }
 0x103   :  { %v3133_v6 = vpop.f32.mrf.mxu0 }
 0x104   :  { %759 = vrot.lane.b32.xlu0 %v3133_v6, %s2627_s23  ;;  %v691_v31 = vadd.f32 %v3148_v12, %v3133_v6 }
 0x106   :  { %v708_v37 = vmul.f32 0.25, %v691_v31 }
 0x108   :  { %v725_v43 = vmax.f32 %v691_v31, %v708_v37 }
 0x10b   :  { %v3137_v8 = vpop.f32.mrf.mxu0 }
 0x10c   :  { %761 = vrot.lane.b32.xlu1 %v3137_v8, %s2627_s23  ;;  %v692_v32 = vadd.f32 %v3148_v12, %v3137_v8 }
 0x10e   :  { %v709_v38 = vmul.f32 0.25, %v692_v32 }
 0x110   :  { %v726_v44 = vmax.f32 %v692_v32, %v709_v38 }
 0x113   :  { %v649_v15 = vpop.f32.mrf.mxu0 }
 0x114   :  { %827 = vrot.lane.b32.xlu1 %v3148_v12, %s2627_s23  ;;  %763 = vrot.lane.b32.xlu2 %v649_v15, %s2627_s23  ;;  %v693_v33 = vadd.f32 %v3148_v12, %v649_v15 }
 0x116   :  { %v710_v39 = vmul.f32 0.25, %v693_v33 }
 0x118   :  { %v727_v42 = vmax.f32 %v693_v33, %v710_v39 }
 0x11b   :  { %v3157_v2 = vpop.f32.mrf.mxu0 }
 0x11c   :  { %765 = vrot.lane.b32.xlu0 %v3157_v2, %s2627_s23  ;;  %v694_v47 = vadd.f32 %v3148_v12, %v3157_v2 }
 0x11e   :  { %v711_v59 = vmul.f32 0.25, %v694_v47 }
 0x120   :  { %v728_v61 = vmax.f32 %v694_v47, %v711_v59 }
 0x123   :  { %v654_v20 = vpop.f32.mrf.mxu0 }
 0x124   :  { %767 = vrot.lane.b32.xlu2 %v654_v20, %s2627_s23  ;;  %v695_v35 = vadd.f32 %v3148_v12, %v654_v20 }
 0x126   :  { %v712_v40 = vmul.f32 0.25, %v695_v35 }
 0x128   :  { %v729_v46 = vmax.f32 %v695_v35, %v712_v40 }
 0x12b   :  { %v3162_v21 = vpop.f32.mrf.mxu0 }
 0x12c   :  { %769 = vrot.lane.b32.xlu0 %v3162_v21, %s2627_s23  ;;  %v696_v3 = vadd.f32 %v3148_v12, %v3162_v21 }
 0x12e   :  { %v713_v7 = vmul.f32 0.25, %v696_v3 }
 0x130   :  { %v730_v2 = vmax.f32 %v696_v3, %v713_v7 }
 0x133   :  { %v3166_v49 = vpop.f32.mrf.mxu0 }
 0x134   :  { %771 = vrot.lane.b32.xlu1 %v3166_v49, %s2627_s23  ;;  %v697_v19 = vadd.f32 %v3148_v12, %v3166_v49 }
 0x136   :  { %v714_v33 = vmul.f32 0.25, %v697_v19 }
 0x139   :  { %v3174_v53 = vpop.f32.mrf.mxu3 }
 0x13b   :  { %v3170_v22 = vpop.f32.mrf.mxu0 }
 0x13c   :  { %773 = vrot.lane.b32.xlu2 %v3170_v22, %s2627_s23  ;;  %v698_v60 = vadd.f32 %v3148_v12, %v3170_v22 }
 0x13e   :  { %v715_v0 = vmul.f32 0.25, %v698_v60 }
 0x140   :  { %v732_v4 = vmax.f32 %v698_v60, %v715_v0 }
 0x141   :  { %v3180_v25 = vpop.f32.mrf.mxu3 }
 0x143   :  { %v3176_v24 = vpop.f32.mrf.mxu0 }
 0x144   :  { %775 = vrot.lane.b32.xlu0 %v3176_v24, %s2627_s23 }
 0x14b   :  { %v3182_v27 = vpop.f32.mrf.mxu0 }
 0x14c   :  { %777 = vrot.lane.b32.xlu1 %v3182_v27, %s2627_s23 }
 0x150   :  { %v3186_v23 = vpop.f32.mrf.mxu3 }
 0x153   :  { %v3188_v28 = vpop.f32.mrf.mxu0 }
 0x154   :  { %783 = vrot.lane.b32.xlu1 %v3174_v53, %s2627_s23  ;;  %779 = vrot.lane.b32.xlu2 %v3188_v28, %s2627_s23  ;;  %v701_v35 = vadd.f32 %v3148_v12, %v3188_v28 }
 0x156   :  { %v718_v40 = vmul.f32 0.25, %v701_v35 }
 0x158   :  { %v3194_v29 = vpop.f32.mrf.mxu3 }
 0x15b   :  { %v3196_v26 = vpop.f32.mrf.mxu0 }
 0x15c   :  { %789 = vrot.lane.b32.xlu1 %v3194_v29, %s2627_s23  ;;  %785 = vrot.lane.b32.xlu2 %v3180_v25, %s2627_s23 }
 0x15d   :  { %781 = vrot.lane.b32.xlu0 %v3196_v26, %s2627_s23 }
 0x165   :  { %787 = vrot.lane.b32.xlu0 %v3186_v23, %s2627_s23 }
 0x16e   :  { %v764_v34 = vpop.permute.xlu2 %763 }
 0x16f   :  { %v812_v48 = vadd.f32 %v764_v34, %v727_v42  ;;  %v699_v42 = vadd.f32 %v3148_v12, %v3176_v24 }
 0x176   :  { %v760_v41 = vpop.permute.xlu0 %759 }
 0x177   :  { %v810_v50 = vadd.f32 %v760_v41, %v725_v43  ;;  %v704_v43 = vadd.f32 %v3148_v12, %v3180_v25  ;;  %v700_v25 = vadd.f32 %v3148_v12, %v3182_v27 }
 0x179   :  { %v721_v47 = vmul.f32 0.25, %v704_v43  ;;  %v717_v7 = vmul.f32 0.25, %v700_v25 }
 0x17d   :  { %v3287_v20 = vpop.f32.mrf.mxu3 }
 0x17e   :  { %v762_v36 = vpop.permute.xlu1 %761  ;;  %v768_v45 = vpop.permute.xlu2 %767 }
 0x17f   :  { %v811_v51 = vadd.f32 %v762_v36, %v726_v44  ;;  %v814_v52 = vadd.f32 %v768_v45, %v729_v46  ;;  %v731_v36 = vmax.f32 %v697_v19, %v714_v33  ;;  %v735_v44 = vmax.f32 %v701_v35, %v718_v40 }
 0x180   :  { %v716_v46 = vmul.f32 0.25, %v699_v42  ;;  %v705_v35 = vadd.f32 %v3148_v12, %v3186_v23 }
 0x182   :  { %v722_v40 = vmul.f32 0.25, %v705_v35 }
 0x185   :  { %v686_v37 = vpop.f32.mrf.mxu3 }
 0x186   :  { %v3266_v54 = vpop.permute.xlu1 %827 }
 0x187   :  { %v830_v55 = vadd.f32 %v3266_v54, %v810_v50  ;;  %v831_v56 = vadd.f32 %v3266_v54, %v811_v51  ;;  %v832_v57 = vadd.f32 %v3266_v54, %v812_v48  ;;  %v834_v58 = vadd.f32 %v3266_v54, %v814_v52 }
 0x189   :  { %866 = vst.msk [vmem:[#allocation2 + $0x1] sm:$0xff] %vm532_vm5, %v830_v55 }
 0x18a   :  { %867 = vst.msk [vmem:[#allocation2 + $0x9] sm:$0xff] %vm532_vm5, %v831_v56 }
 0x18b   :  { %868 = vst.msk [vmem:[#allocation2 + $0x11] sm:$0xff] %vm532_vm5, %v832_v57 }
 0x18c   :  { %871 = vst.msk [vmem:[#allocation2 + $0x22] sm:$0xfe] %vm870_vm9, %v834_v58  ;;  %vm1356_vm9 = vcmask 57344  }
 0x18e   :  { %v766_v62 = vpop.permute.xlu0 %765 }
 0x18f   :  { %v813_v63 = vadd.f32 %v766_v62, %v728_v61  ;;  %v733_v62 = vmax.f32 %v699_v42, %v716_v46  ;;  %v739_v42 = vmax.f32 %v705_v35, %v722_v40 }
 0x190   :  { %v961_v31 = vld [vmem:[#allocation2 + $0x1] sm:$0xff] }
 0x191   :  { %v833_v1 = vadd.f32 %v3266_v54, %v813_v63  ;;  %v908_v10 = vld [vmem:[#allocation2 + $0x1] ss:$2 sm:$0xff]  ;;  %v926_v11 = vld [vmem:[#allocation2 + $0x2] ss:$2 sm:$0xff]  ;;  %v738_v63 = vmax.f32 %v704_v43, %v721_v47 }
 0x192   :  { %v944_v9 = vld [vmem:[#allocation2 + $0x3] ss:$2 sm:$0xff] }
 0x193   :  { %869 = vst.msk [vmem:[#allocation2 + $0x19] sm:$0xff] %vm532_vm5, %v833_v1  ;;  %v962_v32 = vld [vmem:[#allocation2 + $0x9] sm:$0xff] }
 0x194   :  { %v2483_v49 = vpack.i.bf16 %v962_v32, %v961_v31 }
 0x196   :  { %v774_v5 = vpop.permute.xlu2 %773 }
 0x197   :  { %v817_v6 = vadd.f32 %v774_v5, %v732_v4 }
 0x199   :  { %v837_v8 = vadd.f32 %v3266_v54, %v817_v6 }
 0x19a   :  { %v946_v13 = vld [vmem:[#allocation2 + $0x13] ss:$2 sm:$0xff]  ;;  %v928_v15 = vld [vmem:[#allocation2 + $0x12] ss:$2 sm:$0xff] }
 0x19b   :  { %v910_v14 = vld [vmem:[#allocation2 + $0x11] ss:$2 sm:$0xff]  ;;  %874 = vst.msk [vmem:[#allocation2 + $0x3a] sm:$0xff] %vm532_vm5, %v837_v8  ;;  %v2478_v16 = vpack.i.bf16 %v946_v13, %v944_v9  ;;  %v2473_v18 = vpack.i.bf16 %v928_v15, %v926_v11  ;;  %v734_v15 = vmax.f32 %v700_v25, %v717_v7 }
 0x19c   :  { %v2468_v17 = vpack.i.bf16 %v910_v14, %v908_v10  ;;  %v963_v10 = vld [vmem:[#allocation2 + $0x11] sm:$0x1]  ;;  %v703_v14 = vadd.f32 %v3148_v12, %v3174_v53  ;;  %v702_v53 = vadd.f32 %v3148_v12, %v3196_v26 }
 0x19d   :  { %2479 = vrot.lane.b32.xlu1 %v2478_v16, %s2629_s0  ;;  %2474 = vrot.lane.b32.xlu0 %v2473_v18, %s2626_s14 }
 0x19e   :  { %2469 = vrot.lane.b32.xlu2 %v2468_v17, %s2625_s13  ;;  %v770_v21 = vpop.permute.xlu0 %769  ;;  %v720_v18 = vmul.f32 0.25, %v703_v14 }
 0x19f   :  { %v815_v22 = vadd.f32 %v770_v21, %v730_v2  ;;  %v706_v2 = vadd.f32 %v3148_v12, %v3194_v29 }
 0x1a0   :  { %v737_v21 = vmax.f32 %v703_v14, %v720_v18 }
 0x1a1   :  { %v835_v34 = vadd.f32 %v3266_v54, %v815_v22  ;;  %v723_v32 = vmul.f32 0.25, %v706_v2 }
 0x1a3   :  { %872 = vst.msk [vmem:[#allocation2 + $0x2a] sm:$0xff] %vm532_vm5, %v835_v34  ;;  %v719_v34 = vmul.f32 0.25, %v702_v53 }
 0x1a5   :  { %v736_v29 = vmax.f32 %v702_v53, %v719_v34 }
 0x1a6   :  { %2484 = vrot.lane.b32.xlu2 %v2483_v49, %s2630_s2  ;;  %v772_v38 = vpop.permute.xlu1 %771  ;;  %v740_v49 = vmax.f32 %v706_v2, %v723_v32  ;;  %v1185_v2 = vld [vmem:[%s3636_s3 + $0x8] sm:$0x3] }
 0x1a7   :  { %v816_v39 = vadd.f32 %v772_v38, %v731_v36 }
 0x1a9   :  { %v836_v41 = vadd.f32 %v3266_v54, %v816_v39 }
 0x1aa   :  { %v930_v50 = vld [vmem:[#allocation2 + $0x22] ss:$2 sm:$0xff]  ;;  %v948_v51 = vld [vmem:[#allocation2 + $0x23] ss:$2 sm:$0xff] }
 0x1ab   :  { %873 = vst.msk [vmem:[#allocation2 + $0x32] sm:$0xff] %vm532_vm5, %v836_v41  ;;  %v912_v52 = vld [vmem:[#allocation2 + $0x21] ss:$2 sm:$0xff] }
 0x1ac   :  { %v964_v61 = vld [vmem:[#allocation2 + $0x23] sm:$0xff] }
 0x1ad   :  { %v976_v6 = vrot.slane %v964_v61, 7 }
 0x1ae   :  { %v780_v28 = vpop.permute.xlu2 %779 }
 0x1af   :  { %v820_v45 = vadd.f32 %v780_v28, %v735_v44  ;;  %v1002_v11 = vsel %vm204_vm0, %v963_v10, %v976_v6 }
 0x1b1   :  { %v840_v48 = vadd.f32 %v3266_v54, %v820_v45 }
 0x1b2   :  { %v932_v55 = vld [vmem:[#allocation2 + $0x32] ss:$2 sm:$0xff]  ;;  %v950_v56 = vld [vmem:[#allocation2 + $0x33] ss:$2 sm:$0xff] }
 0x1b3   :  { %v914_v57 = vld [vmem:[#allocation2 + $0x31] ss:$2 sm:$0xff]  ;;  %880 = vst.msk [vmem:[#allocation2 + $0x53] sm:$0xff] %vm532_vm5, %v840_v48  ;;  %v2493_v58 = vpack.i.bf16 %v932_v55, %v930_v50  ;;  %v2498_v24 = vpack.i.bf16 %v950_v56, %v948_v51 }
 0x1b4   :  { %v2488_v59 = vpack.i.bf16 %v914_v57, %v912_v52  ;;  %v3305_v60 = vld [vmem:[#allocation2 + $0x2b] sm:$0xff]  ;;  %v966_v23 = vld [vmem:[#allocation2 + $0x33] sm:$0x1] }
 0x1b5   :  { %2494 = vrot.lane.b32.xlu1 %v2493_v58, %s2626_s14  ;;  %2499 = vrot.lane.b32.xlu2 %v2498_v24, %s2629_s0  ;;  %v977_v0 = vrot.slane %v3305_v60, 7  ;;  %v979_v24 = vrot.slane %v966_v23, 7 }
 0x1b6   :  { %2489 = vrot.lane.b32.xlu0 %v2488_v59, %s2625_s13  ;;  %v776_v1 = vpop.permute.xlu0 %775  ;;  %v786_v3 = vpop.permute.xlu2 %785 }
 0x1b7   :  { %v818_v4 = vadd.f32 %v776_v1, %v733_v62  ;;  %v823_v5 = vadd.f32 %v786_v3, %v738_v63  ;;  %v978_v9 = vsel %vm204_vm0, %v976_v6, %v977_v0  ;;  %v980_v61 = vsel %vm204_vm0, %v977_v0, %v979_v24 }
 0x1b8   :  { %v2503_v13 = vpack.i.bf16 %v978_v9, %v1002_v11 }
 0x1b9   :  { %v838_v27 = vadd.f32 %v3266_v54, %v818_v4  ;;  %v843_v8 = vadd.f32 %v3266_v54, %v823_v5 }
 0x1ba   :  { %v969_v10 = vld [vmem:[#allocation2 + $0x55] sm:$0x1] }
 0x1bb   :  { %876 = vst.msk [vmem:[#allocation2 + $0x42] sm:$0x1] %vm875_vm11, %v838_v27  ;;  %v989_v0 = vrot.slane %v969_v10, 6  ;;  %vm1362_vm11 = vcmask 64515  }
 0x1bc   :  { %878 = vst.msk [vmem:[#allocation2 + $0x43] sm:$0xfc] %vm877_vm12, %v838_v27  ;;  %vm1572_vm12 = vcmask 1043456  }
 0x1bd   :  { %885 = vst.msk [vmem:[#allocation2 + $0x6c] sm:$0xff] %vm532_vm5, %v843_v8  ;;  %791 = vrot.lane.b32.xlu1 %v3287_v20, %s2627_s23 }
 0x1be   :  { %2504 = vrot.lane.b32.xlu0 %v2503_v13, %s2630_s2  ;;  %v778_v16 = vpop.permute.xlu1 %777 }
 0x1bf   :  { %v819_v17 = vadd.f32 %v778_v16, %v734_v15 }
 0x1c1   :  { %v839_v19 = vadd.f32 %v3266_v54, %v819_v17 }
 0x1c3   :  { %879 = vst.msk [vmem:[#allocation2 + $0x4b] sm:$0xff] %vm532_vm5, %v839_v19 }
 0x1c6   :  { %v784_v22 = vpop.permute.xlu1 %783 }
 0x1c7   :  { %v822_v31 = vadd.f32 %v784_v22, %v737_v21  ;;  %v1197_v21 = vunpack.c.l.b16 %v1185_v2 }
 0x1c9   :  { %v842_v33 = vadd.f32 %v3266_v54, %v822_v31  ;;  %v1199_v53 = vpack.c.b16 %v1197_v21, %v1197_v21  ;;  %v2274_v31 = vld [vmem:[%s3636_s3] sm:$0xff]  ;;  %s2631_s3 = smov 120  }
 0x1ca   :  { %v952_v28 = vld [vmem:[#allocation2 + $0x43] ss:$2 sm:$0xff]  ;;  %v934_v45 = vld [vmem:[#allocation2 + $0x42] ss:$2 sm:$0xff] }
 0x1cb   :  { %882 = vst.msk [vmem:[#allocation2 + $0x63] sm:$0x3] %vm864_vm10, %v842_v33  ;;  %v916_v47 = vld [vmem:[#allocation2 + $0x41] ss:$2 sm:$0xff]  ;;  %v1218_v22 = vsel %vm221_vm1, %v1199_v53, 0  ;;  %vm1358_vm10 = vcmask 64514  }
 0x1cc   :  { %884 = vst.msk [vmem:[#allocation2 + $0x64] sm:$0xf8] %vm883_vm13, %v842_v33  ;;  %v967_v48 = vld [vmem:[#allocation2 + $0x45] sm:$0xff]  ;;  %v968_v50 = vld [vmem:[#allocation2 + $0x4d] sm:$0xff]  ;;  %1226 = vmatpush.bf16.msra.mxu1 %v1218_v22  ;;  %vm1365_vm13 = vcmask 59392  }
 0x1cd   :  { %v986_v59 = vrot.slane %v967_v48, 6  ;;  %v987_v25 = vrot.slane %v968_v50, 6 }
 0x1ce   :  { %v790_v36 = vpop.permute.xlu1 %789 }
 0x1cf   :  { %v825_v37 = vadd.f32 %v790_v36, %v740_v49  ;;  %v782_v38 = vpop.permute.xlu0 %781  ;;  %v988_v1 = vsel %vm221_vm1, %v986_v59, %v987_v25  ;;  %v1003_v3 = vsel %vm221_vm1, %v980_v61, %v986_v59  ;;  %v990_v14 = vsel %vm221_vm1, %v987_v25, %v989_v0  ;;  %v894_v25 = vld [vmem:[#allocation2 + $0x20] ss:$2 sm:$0xff]  ;;  %v896_v61 = vld [vmem:[#allocation2 + $0x30] ss:$2 sm:$0xff] }
 0x1d0   :  { %v821_v39 = vadd.f32 %v782_v38, %v736_v29  ;;  %v2523_v9 = vpack.i.bf16 %v988_v1, %v1003_v3  ;;  %1227 = vmatpush.bf16.msra.mxu1 %v2274_v31  ;;  %v890_v38 = vld [vmem:[#allocation2] ss:$2 sm:$0xff] }
 0x1d1   :  { %v845_v26 = vadd.f32 %v3266_v54, %v825_v37 }
 0x1d2   :  { %v841_v41 = vadd.f32 %v3266_v54, %v821_v39  ;;  %v892_v39 = vld [vmem:[#allocation2 + $0x10] ss:$2 sm:$0xff] }
 0x1d3   :  { %887 = vst.msk [vmem:[#allocation2 + $0x7c] sm:$0xff] %vm532_vm5, %v845_v26  ;;  %v970_v8 = vld [vmem:[#allocation2 + $0x67] sm:$0xff] }
 0x1d4   :  { %881 = vst.msk [vmem:[#allocation2 + $0x5b] sm:$0xff] %vm532_vm5, %v841_v41  ;;  %v996_v60 = vrot.slane %v970_v8, 5  ;;  %v956_v18 = vld [vmem:[#allocation2 + $0x63] ss:$2 sm:$0xff] }
 0x1d6   :  { %v1004_v16 = vsel %vm238_vm2, %v990_v14, %v996_v60 }
 0x1d7   :  { %v788_v43 = vpop.permute.xlu0 %787 }
 0x1d8   :  { %v824_v44 = vadd.f32 %v788_v43, %v739_v42 }
 0x1da   :  { %v844_v46 = vadd.f32 %v3266_v54, %v824_v44 }
 0x1db   :  { %v954_v51 = vld [vmem:[#allocation2 + $0x53] ss:$2 sm:$0xff]  ;;  %v936_v52 = vld [vmem:[#allocation2 + $0x52] ss:$2 sm:$0xff]  ;;  %v938_v62 = vld [vmem:[#allocation2 + $0x62] ss:$2 sm:$0xff] }
 0x1dc   :  { %v918_v55 = vld [vmem:[#allocation2 + $0x51] ss:$2 sm:$0xff]  ;;  %886 = vst.msk [vmem:[#allocation2 + $0x74] sm:$0xff] %vm532_vm5, %v844_v46  ;;  %v2518_v56 = vpack.i.bf16 %v954_v51, %v952_v28  ;;  %v2513_v57 = vpack.i.bf16 %v936_v52, %v934_v45  ;;  %v920_v63 = vld [vmem:[#allocation2 + $0x61] ss:$2 sm:$0xff]  ;;  %v707_v51 = vadd.f32 %v3148_v12, %v3287_v20 }
 0x1dd   :  { %v2508_v58 = vpack.i.bf16 %v918_v55, %v916_v47 }
 0x1de   :  { %2519 = vrot.lane.b32.xlu1 %v2518_v56, %s2629_s0  ;;  %2514 = vrot.lane.b32.xlu0 %v2513_v57, %s2626_s14 }
 0x1df   :  { %2509 = vrot.lane.b32.xlu2 %v2508_v58, %s2625_s13  ;;  %v724_v58 = vmul.f32 0.25, %v707_v51 }
 0x1e1   :  { %v741_v3 = vmax.f32 %v707_v51, %v724_v58 }
 0x1e3   :  { %v940_v4 = vld [vmem:[#allocation2 + $0x72] ss:$2 sm:$0xff]  ;;  %v922_v5 = vld [vmem:[#allocation2 + $0x71] ss:$2 sm:$0xff] }
 0x1e4   :  { %v3349_v6 = vld [vmem:[#allocation2 + $0x6f] sm:$0xff]  ;;  %v2533_v7 = vpack.i.bf16 %v940_v4, %v938_v62  ;;  %v2528_v27 = vpack.i.bf16 %v922_v5, %v920_v63 }
 0x1e5   :  { %v997_v11 = vrot.slane %v3349_v6, 5  ;;  %v958_v15 = vld [vmem:[#allocation2 + $0x73] ss:$2 sm:$0xff] }
 0x1e6   :  { %2534 = vrot.lane.b32.xlu1 %v2533_v7, %s2626_s14  ;;  %2529 = vrot.lane.b32.xlu0 %v2528_v27, %s2625_s13  ;;  %v2538_v19 = vpack.i.bf16 %v958_v15, %v956_v18 }
 0x1e7   :  { %2524 = vrot.lane.b32.xlu2 %v2523_v9, %s2630_s2  ;;  %v998_v13 = vsel %vm238_vm2, %v996_v60, %v997_v11 }
 0x1e8   :  { %v2543_v17 = vpack.i.bf16 %v998_v13, %v1004_v16 }
 0x1ee   :  { %2544 = vrot.lane.b32.xlu0 %v2543_v17, %s2630_s2 }
 0x1ef   :  { %2539 = vrot.lane.b32.xlu2 %v2538_v19, %s2629_s0 }
 0x1f8   :  { %v2470_v32 = vpop.permute.xlu2 %2469 }
 0x1f9   :  { %v2472_v33 = vunpack.i.h.bf16 %v2470_v32  ;;  %v2471_v34 = vunpack.i.l.bf16 %v2470_v32 }
 0x1fb   :  { %v1146_v41 = vsel %vm532_vm5, %v892_v39, %v2472_v33  ;;  %v1145_v42 = vsel %vm532_vm5, %v890_v38, %v2471_v34 }
 0x200   :  { %v2485_v35 = vpop.permute.xlu2 %2484 }
 0x201   :  { %v2487_v43 = vunpack.i.h.bf16 %v2485_v35  ;;  %v2486_v44 = vunpack.i.l.bf16 %v2485_v35  ;;  %v900_v35 = vld [vmem:[#allocation2 + $0x50] ss:$2 sm:$0xff] }
 0x20f   :  { %v2480_v49 = vpop.permute.xlu1 %2479  ;;  %v2475_v37 = vpop.permute.xlu0 %2474 }
 0x210   :  { %v2482_v36 = vunpack.i.h.bf16 %v2480_v49  ;;  %v2481_v29 = vunpack.i.l.bf16 %v2480_v49  ;;  %v2477_v26 = vunpack.i.h.bf16 %v2475_v37  ;;  %v2476_v40 = vunpack.i.l.bf16 %v2475_v37  ;;  %v2500_v1 = vpop.permute.xlu2 %2499  ;;  %v898_v49 = vld [vmem:[#allocation2 + $0x40] ss:$2 sm:$0xff] }
 0x211   :  { %v2502_v20 = vunpack.i.h.bf16 %v2500_v1  ;;  %v2501_v7 = vunpack.i.l.bf16 %v2500_v1 }
 0x212   :  { %v1155_v28 = vsel %vm568_vm7, %v1146_v41, %v2477_v26  ;;  %v1154_v45 = vsel %vm568_vm7, %v1145_v42, %v2476_v40 }
 0x213   :  { %v1164_v23 = vsel %vm1163_vm15, %v1154_v45, %v2481_v29  ;;  %v1165_v46 = vsel %vm1163_vm15, %v1155_v28, %v2482_v36 }
 0x214   :  { %v1174_v47 = vsel %vm1173_vm14, %v1164_v23, %v2486_v44  ;;  %v1175_v48 = vsel %vm1173_vm14, %v1165_v46, %v2487_v43 }
 0x215   :  { %v1187_v50 = vpack.c.bf16 %v1175_v48, %v1174_v47 }
 0x217   :  { %2212 = vmatmul.msk.bf16.vlgmr.msra.gmra.mxu1 %vm1201_vm4, %v1187_v50 }
 0x227   :  { %v2495_v52 = vpop.permute.xlu1 %2494 }
 0x228   :  { %v2490_v55 = vpop.permute.xlu0 %2489  ;;  %v2497_v24 = vunpack.i.h.bf16 %v2495_v52  ;;  %v2496_v59 = vunpack.i.l.bf16 %v2495_v52  ;;  %v904_v52 = vld [vmem:[#allocation2 + $0x70] ss:$2 sm:$0xff] }
 0x229   :  { %v2492_v56 = vunpack.i.h.bf16 %v2490_v55  ;;  %v2491_v57 = vunpack.i.l.bf16 %v2490_v55  ;;  %v902_v55 = vld [vmem:[#allocation2 + $0x60] ss:$2 sm:$0xff] }
 0x22b   :  { %v1148_v62 = vsel %vm532_vm5, %v896_v61, %v2492_v56  ;;  %v1147_v63 = vsel %vm532_vm5, %v894_v25, %v2491_v57 }
 0x22c   :  { %v1157_v4 = vsel %vm568_vm7, %v1148_v62, %v2497_v24  ;;  %v1156_v5 = vsel %vm568_vm7, %v1147_v63, %v2496_v59 }
 0x22d   :  { %v1166_v0 = vsel %vm1163_vm15, %v1156_v5, %v2501_v7  ;;  %v1167_v13 = vsel %vm1163_vm15, %v1157_v4, %v2502_v20 }
 0x22f   :  { %v792_v12 = vpop.permute.xlu1 %791 }
 0x230   :  { %v826_v27 = vadd.f32 %v792_v12, %v741_v3  ;;  %v2505_v8 = vpop.permute.xlu0 %2504 }
 0x231   :  { %v2507_v9 = vunpack.i.h.bf16 %v2505_v8  ;;  %v2506_v10 = vunpack.i.l.bf16 %v2505_v8  ;;  %v3430_v8 = vld [vmem:[%s3635_s4] ss:$0 sm:$0xff]  ;;  %s2632_s4 = smov 32  }
 0x232   :  { %v846_v60 = vadd.f32 %v3266_v54, %v826_v27  ;;  %v972_v54 = vld [vmem:[#allocation2 + $0x77] sm:$0x1] }
 0x233   :  { %v1176_v14 = vsel %vm1173_vm14, %v1166_v0, %v2506_v10  ;;  %v1177_v15 = vsel %vm1173_vm14, %v1167_v13, %v2507_v9  ;;  %v999_v2 = vrot.slane %v972_v54, 5 }
 0x234   :  { %889 = vst.msk [vmem:[#allocation2 + $0x84] sm:$0x7] %vm888_vm6, %v846_v60  ;;  %v1188_v16 = vpack.c.bf16 %v1177_v15, %v1176_v14  ;;  %vm1562_vm6 = vcmask 326656  }
 0x235   :  { %v1000_v21 = vsel %vm238_vm2, %v997_v11, %v999_v2 }
 0x236   :  { %2213 = vmatmul.msk.bf16.gmra.mxu1 %vm1201_vm4, %v1188_v16 }
 0x239   :  { %v2510_v53 = vpop.permute.xlu2 %2509 }
 0x23a   :  { %v2512_v22 = vunpack.i.h.bf16 %v2510_v53  ;;  %v2511_v31 = vunpack.i.l.bf16 %v2510_v53 }
 0x23b   :  { %v924_v17 = vld [vmem:[#allocation2 + $0x81] ss:$2 sm:$0xf]  ;;  %v942_v19 = vld [vmem:[#allocation2 + $0x82] ss:$2 sm:$0xf] }
 0x23c   :  { %v960_v18 = vld [vmem:[#allocation2 + $0x83] ss:$2 sm:$0xf]  ;;  %1030 = vrot.lane.b32.xlu1 %v924_v17, %s2625_s13  ;;  %1066 = vrot.lane.b32.xlu2 %v942_v19, %s2626_s14  ;;  %v1149_v39 = vsel %vm532_vm5, %v898_v49, %v2511_v31  ;;  %v1150_v6 = vsel %vm532_vm5, %v900_v35, %v2512_v22  ;;  %v906_v10 = vld [vmem:[#allocation2 + $0x80] ss:$2 sm:$0xf] }
 0x23d   :  { %1102 = vrot.lane.b32.xlu0 %v960_v18, %s2629_s0  ;;  %s2636_s0 = smov 64  }
 0x241   :  { %v2525_v32 = vpop.permute.xlu2 %2524 }
 0x242   :  { %v2527_v26 = vunpack.i.h.bf16 %v2525_v32  ;;  %v2526_v11 = vunpack.i.l.bf16 %v2525_v32 }
 0x244   :  { %1134 = vrot.lane.b32.xlu1 %v1000_v21, %s2630_s2 }
 0x249   :  { %v2540_v58 = vpop.permute.xlu2 %2539 }
 0x24a   :  { %v2542_v25 = vunpack.i.h.bf16 %v2540_v58  ;;  %v2541_v61 = vunpack.i.l.bf16 %v2540_v58 }
 0x250   :  { %v2520_v33 = vpop.permute.xlu1 %2519  ;;  %v2515_v34 = vpop.permute.xlu0 %2514 }
 0x251   :  { %v2522_v36 = vunpack.i.h.bf16 %v2520_v33  ;;  %v2521_v29 = vunpack.i.l.bf16 %v2520_v33  ;;  %v2517_v37 = vunpack.i.h.bf16 %v2515_v34  ;;  %v2516_v38 = vunpack.i.l.bf16 %v2515_v34 }
 0x253   :  { %v1158_v40 = vsel %vm568_vm7, %v1149_v39, %v2516_v38  ;;  %v1159_v41 = vsel %vm568_vm7, %v1150_v6, %v2517_v37 }
 0x254   :  { %v1168_v42 = vsel %vm1163_vm15, %v1158_v40, %v2521_v29  ;;  %v1169_v43 = vsel %vm1163_vm15, %v1159_v41, %v2522_v36 }
 0x255   :  { %v1178_v44 = vsel %vm1173_vm14, %v1168_v42, %v2526_v11  ;;  %v1179_v28 = vsel %vm1173_vm14, %v1169_v43, %v2527_v26 }
 0x256   :  { %v1189_v45 = vpack.c.bf16 %v1179_v28, %v1178_v44 }
 0x258   :  { %v2535_v23 = vpop.permute.xlu1 %2534  ;;  %v2530_v46 = vpop.permute.xlu0 %2529  ;;  %2214 = vmatmul.msk.bf16.gmra.mxu1 %vm1201_vm4, %v1189_v45 }
 0x259   :  { %v2532_v47 = vunpack.i.h.bf16 %v2530_v46  ;;  %v2531_v48 = vunpack.i.l.bf16 %v2530_v46  ;;  %v2537_v50 = vunpack.i.h.bf16 %v2535_v23  ;;  %v2536_v51 = vunpack.i.l.bf16 %v2535_v23 }
 0x25b   :  { %v1152_v56 = vsel %vm532_vm5, %v904_v52, %v2532_v47  ;;  %v1151_v57 = vsel %vm532_vm5, %v902_v55, %v2531_v48 }
 0x25c   :  { %v1161_v24 = vsel %vm568_vm7, %v1152_v56, %v2537_v50  ;;  %v1160_v59 = vsel %vm568_vm7, %v1151_v57, %v2536_v51 }
 0x25d   :  { %v1170_v3 = vsel %vm1163_vm15, %v1160_v59, %v2541_v61  ;;  %v1171_v4 = vsel %vm1163_vm15, %v1161_v24, %v2542_v25 }
 0x260   :  { %v2545_v62 = vpop.permute.xlu0 %2544 }
 0x261   :  { %v2547_v63 = vunpack.i.h.bf16 %v2545_v62  ;;  %v2546_v1 = vunpack.i.l.bf16 %v2545_v62 }
 0x263   :  { %v1180_v5 = vsel %vm1173_vm14, %v1170_v3, %v2546_v1  ;;  %v1181_v12 = vsel %vm1173_vm14, %v1171_v4, %v2547_v63 }
 0x264   :  { %v1190_v20 = vpack.c.bf16 %v1181_v12, %v1180_v5 }
 0x268   :  { %2215 = vmatmul.msk.bf16.gmra.mxu1 %vm1201_vm4, %v1190_v20 }
 0x294   :  { %v1229_v7 = vpop.f32.mrf.mxu1 }
 0x295   :  { %1292 = vrot.lane.b32.xlu2 %v1229_v7, %s2631_s3  ;;  %v1256_v31 = vadd.f32 %v3430_v8, %v1229_v7 }
 0x296   :  { %v1067_v0 = vpop.permute.xlu2 %1066 }
 0x297   :  { %v1265_v35 = vmul.f32 0.25, %v1256_v31 }
 0x299   :  { %v1274_v37 = vmax.f32 %v1256_v31, %v1265_v35 }
 0x29c   :  { %v1231_v27 = vpop.f32.mrf.mxu1 }
 0x29d   :  { %1294 = vrot.lane.b32.xlu0 %v1231_v27, %s2631_s3  ;;  %v1257_v32 = vadd.f32 %v3430_v8, %v1231_v27 }
 0x29f   :  { %v1266_v36 = vmul.f32 0.25, %v1257_v32 }
 0x2a1   :  { %v1275_v38 = vmax.f32 %v1257_v32, %v1266_v36 }
 0x2a5   :  { %1328 = vrot.lane.b32.xlu0 %v3430_v8, %s2631_s3 }
 0x2ae   :  { %v1031_v9 = vpop.permute.xlu1 %1030 }
 0x2af   :  { %v1153_v60 = vsel %vm532_vm5, %v906_v10, %v1031_v9  ;;  %v1103_v15 = vpop.permute.xlu0 %1102  ;;  %vm1353_vm5 = vcmask 64513  }
 0x2b0   :  { %v1162_v13 = vsel %vm568_vm7, %v1153_v60, %v1067_v0 }
 0x2b1   :  { %v1172_v16 = vsel %vm1163_vm15, %v1162_v13, %v1103_v15  ;;  %vm1526_vm15 = vcmask 195584  }
 0x2b3   :  { %v1234_v14 = vpop.f32.mrf.mxu1 }
 0x2b4   :  { %1296 = vrot.lane.b32.xlu1 %v1234_v14, %s2631_s3  ;;  %v1258_v28 = vadd.f32 %v3430_v8, %v1234_v14 }
 0x2b6   :  { %v1135_v17 = vpop.permute.xlu1 %1134  ;;  %v1267_v45 = vmul.f32 0.25, %v1258_v28 }
 0x2b7   :  { %v1182_v18 = vsel %vm1173_vm14, %v1172_v16, %v1135_v17 }
 0x2b8   :  { %v1191_v19 = vpack.c.bf16 %v1182_v18, %v1182_v18  ;;  %v1276_v23 = vmax.f32 %v1258_v28, %v1267_v45 }
 0x2ba   :  { %2216 = vmatmul.msk.bf16.gmra.mxu1 %vm1201_vm4, %v1191_v19  ;;  %vm1532_vm4 = vcmask 261120  }
 0x2bb   :  { %v1236_v54 = vpop.f32.mrf.mxu1 }
 0x2bc   :  { %1298 = vrot.lane.b32.xlu2 %v1236_v54, %s2631_s3  ;;  %v1259_v33 = vadd.f32 %v3430_v8, %v1236_v54 }
 0x2be   :  { %v1268_v29 = vmul.f32 0.25, %v1259_v33 }
 0x2c0   :  { %v1277_v39 = vmax.f32 %v1259_v33, %v1268_v29 }
 0x2d5   :  { %v3441_v2 = vpop.f32.mrf.mxu1 }
 0x2d6   :  { %1300 = vrot.lane.b32.xlu1 %v3441_v2, %s2631_s3  ;;  %v1260_v10 = vadd.f32 %v3430_v8, %v3441_v2 }
 0x2d8   :  { %v1269_v0 = vmul.f32 0.25, %v1260_v10 }
 0x2da   :  { %v1278_v13 = vmax.f32 %v1260_v10, %v1269_v0 }
 0x2dd   :  { %v1241_v21 = vpop.f32.mrf.mxu1 }
 0x2de   :  { %1302 = vrot.lane.b32.xlu2 %v1241_v21, %s2631_s3  ;;  %v1261_v50 = vadd.f32 %v3430_v8, %v1241_v21 }
 0x2e0   :  { %v1270_v58 = vmul.f32 0.25, %v1261_v50 }
 0x2e2   :  { %v1279_v61 = vmax.f32 %v1261_v50, %v1270_v58 }
 0x2e5   :  { %v3446_v53 = vpop.f32.mrf.mxu1 }
 0x2e6   :  { %1304 = vrot.lane.b32.xlu0 %v3446_v53, %s2631_s3  ;;  %v1262_v17 = vadd.f32 %v3430_v8, %v3446_v53 }
 0x2e8   :  { %v1271_v18 = vmul.f32 0.25, %v1262_v17 }
 0x2ea   :  { %v1280_v54 = vmax.f32 %v1262_v17, %v1271_v18 }
 0x2ed   :  { %v3450_v22 = vpop.f32.mrf.mxu1 }
 0x2ee   :  { %1306 = vrot.lane.b32.xlu1 %v3450_v22, %s2631_s3  ;;  %v1263_v19 = vadd.f32 %v3430_v8, %v3450_v22 }
 0x2ef   :  { %v1293_v34 = vpop.permute.xlu2 %1292 }
 0x2f0   :  { %v1319_v26 = vadd.f32 %v1293_v34, %v1274_v37  ;;  %v1272_v31 = vmul.f32 0.25, %v1263_v19 }
 0x2f2   :  { %v1281_v33 = vmax.f32 %v1263_v19, %v1272_v31 }
 0x30f   :  { %v1295_v49 = vpop.permute.xlu0 %1294 }
 0x310   :  { %v1320_v11 = vadd.f32 %v1295_v49, %v1275_v38 }
 0x316   :  { %v1299_v6 = vpop.permute.xlu2 %1298 }
 0x317   :  { %v1322_v40 = vadd.f32 %v1299_v6, %v1277_v39  ;;  %v3457_v41 = vpop.permute.xlu0 %1328 }
 0x318   :  { %v1331_v42 = vadd.f32 %v3457_v41, %v1319_v26  ;;  %v1332_v43 = vadd.f32 %v3457_v41, %v1320_v11 }
 0x319   :  { %v1334_v44 = vadd.f32 %v3457_v41, %v1322_v40 }
 0x31a   :  { %1351 = vst.msk [vmem:[#allocation3 + $0x1] sm:$0xff] %vm568_vm7, %v1331_v42 }
 0x31b   :  { %1352 = vst.msk [vmem:[#allocation3 + $0x9] sm:$0xff] %vm568_vm7, %v1332_v43 }
 0x31c   :  { %1355 = vst.msk [vmem:[#allocation3 + $0x1a] sm:$0xff] %vm568_vm7, %v1334_v44 }
 0x321   :  { %v1406_v5 = vld [vmem:[#allocation3 + $0x1] sm:$0xff] }
 0x322   :  { %v1377_v51 = vld [vmem:[#allocation3 + $0x1] ss:$2 sm:$0xff]  ;;  %v1387_v52 = vld [vmem:[#allocation3 + $0x2] ss:$2 sm:$0xff] }
 0x323   :  { %v1407_v63 = vld [vmem:[#allocation3 + $0x9] sm:$0x1]  ;;  %v1409_v44 = vld [vmem:[#allocation3 + $0x1b] sm:$0x1] }
 0x324   :  { %v1397_v27 = vld [vmem:[#allocation3 + $0x3] ss:$2 sm:$0xff] }
 0x326   :  { %v1297_v46 = vpop.permute.xlu1 %1296 }
 0x327   :  { %v1321_v47 = vadd.f32 %v1297_v46, %v1276_v23  ;;  %v1417_v23 = vrot.slane %v1409_v44, 7 }
 0x329   :  { %v1333_v48 = vadd.f32 %v3457_v41, %v1321_v47 }
 0x32b   :  { %1354 = vst.msk [vmem:[#allocation3 + $0x12] sm:$0xfe] %vm1353_vm5, %v1333_v48  ;;  %vm1658_vm5 = vcmask 130049  }
 0x332   :  { %v1379_v55 = vld [vmem:[#allocation3 + $0x11] ss:$2 sm:$0xff]  ;;  %v1389_v56 = vld [vmem:[#allocation3 + $0x12] ss:$2 sm:$0xff] }
 0x333   :  { %v3470_v57 = vld [vmem:[#allocation3 + $0x13] sm:$0xff]  ;;  %v2548_v24 = vpack.i.bf16 %v1379_v55, %v1377_v51  ;;  %v2553_v59 = vpack.i.bf16 %v1389_v56, %v1387_v52  ;;  %v1542_v52 = vld [vmem:[%s3637_s5 + $0x10] sm:$0xf] }
 0x334   :  { %v1416_v25 = vrot.slane %v3470_v57, 7  ;;  %v1399_v7 = vld [vmem:[#allocation3 + $0x13] ss:$2 sm:$0xff]  ;;  %v1556_v55 = vunpack.c.l.b16 %v1542_v52 }
 0x335   :  { %2549 = vrot.lane.b32.xlu0 %v2548_v24, %s2626_s14  ;;  %2554 = vrot.lane.b32.xlu1 %v2553_v59, %s2630_s2  ;;  %v2558_v9 = vpack.i.bf16 %v1399_v7, %v1397_v27  ;;  %v2276_v57 = vld [vmem:[%s3637_s5 + $0x8] sm:$0xff] }
 0x336   :  { %v1434_v3 = vsel %vm204_vm0, %v1407_v63, %v1416_v25  ;;  %v1418_v48 = vsel %vm204_vm0, %v1416_v25, %v1417_v23  ;;  %v1559_v58 = vpack.c.b16 %v1556_v55, %v1556_v55  ;;  %v2275_v25 = vld [vmem:[%s3637_s5] sm:$0xff]  ;;  %s2634_s5 = smov 112  }
 0x337   :  { %v3475_v62 = vpop.f32.mrf.mxu1  ;;  %v2563_v20 = vpack.i.bf16 %v1434_v3, %v1406_v5 }
 0x338   :  { %v1303_v1 = vpop.permute.xlu2 %1302  ;;  %1308 = vrot.lane.b32.xlu2 %v3475_v62, %s2631_s3  ;;  %v1264_v56 = vadd.f32 %v3430_v8, %v3475_v62  ;;  %v1574_v24 = vsel %vm1572_vm12, %v1559_v58, 0  ;;  %vm1707_vm12 = vcmask 1046528  }
 0x339   :  { %v1324_v4 = vadd.f32 %v1303_v1, %v1279_v61  ;;  %1581 = vmatpush.bf16.msra.mxu2 %v1574_v24 }
 0x33a   :  { %v1273_v59 = vmul.f32 0.25, %v1264_v56 }
 0x33b   :  { %v1336_v12 = vadd.f32 %v3457_v41, %v1324_v4 }
 0x33c   :  { %v1282_v61 = vmax.f32 %v1264_v56, %v1273_v59 }
 0x33d   :  { %1360 = vst.msk [vmem:[#allocation3 + $0x2b] sm:$0xff] %vm568_vm7, %v1336_v12  ;;  %2564 = vrot.lane.b32.xlu0 %v2563_v20, %s2632_s4  ;;  %1582 = vmatpush.bf16.msra.mxu2 %v2276_v57 }
 0x33f   :  { %v1251_v60 = vpop.f32.mrf.mxu1 }
 0x340   :  { %2559 = vrot.lane.b32.xlu2 %v2558_v9, %s2633_s18  ;;  %v1369_v60 = vld [vmem:[#allocation3 + $0x10] ss:$2 sm:$0xff] }
 0x341   :  { %1583 = vmatpush.bf16.msra.mxu2 %v2275_v25 }
 0x344   :  { %v1411_v36 = vld [vmem:[#allocation3 + $0x2d] sm:$0x1] }
 0x345   :  { %v1424_v45 = vrot.slane %v1411_v36, 6 }
 0x348   :  { %v1301_v14 = vpop.permute.xlu1 %1300 }
 0x349   :  { %v1323_v15 = vadd.f32 %v1301_v14, %v1278_v13 }
 0x34b   :  { %v1335_v16 = vadd.f32 %v3457_v41, %v1323_v15 }
 0x34d   :  { %1357 = vst.msk [vmem:[#allocation3 + $0x22] sm:$0x1] %vm1356_vm9, %v1335_v16  ;;  %vm1662_vm9 = vcmask 130050  }
 0x34e   :  { %1359 = vst.msk [vmem:[#allocation3 + $0x23] sm:$0xfc] %vm1358_vm10, %v1335_v16  ;;  %vm1665_vm10 = vcmask 130051  }
 0x355   :  { %v1410_v53 = vld [vmem:[#allocation3 + $0x25] sm:$0xff] }
 0x356   :  { %v1401_v22 = vld [vmem:[#allocation3 + $0x23] ss:$2 sm:$0xff]  ;;  %v1391_v37 = vld [vmem:[#allocation3 + $0x22] ss:$2 sm:$0xff]  ;;  %v1423_v43 = vrot.slane %v1410_v53, 6 }
 0x357   :  { %v1381_v29 = vld [vmem:[#allocation3 + $0x21] ss:$2 sm:$0xff] }
 0x358   :  { %v1305_v2 = vpop.permute.xlu0 %1304  ;;  %v1425_v46 = vsel %vm221_vm1, %v1423_v43, %v1424_v45  ;;  %v1435_v50 = vsel %vm221_vm1, %v1418_v48, %v1423_v43 }
 0x359   :  { %v1325_v21 = vadd.f32 %v1305_v2, %v1280_v54 }
 0x35b   :  { %v1337_v32 = vadd.f32 %v3457_v41, %v1325_v21 }
 0x35d   :  { %1361 = vst.msk [vmem:[#allocation3 + $0x33] sm:$0x3] %vm1349_vm8, %v1337_v32  ;;  %vm1660_vm8 = vcmask 122880  }
 0x35e   :  { %1363 = vst.msk [vmem:[#allocation3 + $0x34] sm:$0xf8] %vm1362_vm11, %v1337_v32  ;;  %vm1667_vm11 = vcmask 124928  }
 0x360   :  { %v1307_v34 = vpop.permute.xlu1 %1306 }
 0x361   :  { %v1326_v49 = vadd.f32 %v1307_v34, %v1281_v33 }
 0x363   :  { %v1338_v35 = vadd.f32 %v3457_v41, %v1326_v49 }
 0x365   :  { %1364 = vst.msk [vmem:[#allocation3 + $0x3c] sm:$0xff] %vm568_vm7, %v1338_v35 }
 0x36c   :  { %v1403_v38 = vld [vmem:[#allocation3 + $0x33] ss:$2 sm:$0xff]  ;;  %v1393_v6 = vld [vmem:[#allocation3 + $0x32] ss:$2 sm:$0xff] }
 0x36d   :  { %v1383_v39 = vld [vmem:[#allocation3 + $0x31] ss:$2 sm:$0xff]  ;;  %v2578_v26 = vpack.i.bf16 %v1403_v38, %v1401_v22  ;;  %v2573_v40 = vpack.i.bf16 %v1393_v6, %v1391_v37  ;;  %v1371_v37 = vld [vmem:[#allocation3 + $0x20] ss:$2 sm:$0xff]  ;;  %v1373_v38 = vld [vmem:[#allocation3 + $0x30] ss:$2 sm:$0xff] }
 0x36e   :  { %v2568_v11 = vpack.i.bf16 %v1383_v39, %v1381_v29  ;;  %v1412_v42 = vld [vmem:[#allocation3 + $0x37] sm:$0xff]  ;;  %v1413_v5 = vld [vmem:[#allocation3 + $0x3f] sm:$0x1] }
 0x36f   :  { %v1430_v28 = vrot.slane %v1412_v42, 5  ;;  %2579 = vrot.lane.b32.xlu0 %v2578_v26, %s2633_s18  ;;  %2574 = vrot.lane.b32.xlu2 %v2573_v40, %s2630_s2  ;;  %v1431_v12 = vrot.slane %v1413_v5, 5 }
 0x370   :  { %2569 = vrot.lane.b32.xlu1 %v2568_v11, %s2626_s14 }
 0x371   :  { %v1436_v47 = vsel %vm238_vm2, %v1425_v46, %v1430_v28  ;;  %v1432_v27 = vsel %vm238_vm2, %v1430_v28, %v1431_v12 }
 0x372   :  { %v2583_v51 = vpack.i.bf16 %v1436_v47, %v1435_v50 }
 0x378   :  { %2584 = vrot.lane.b32.xlu1 %v2583_v51, %s2632_s4 }
 0x392   :  { %v1309_v63 = vpop.permute.xlu2 %1308 }
 0x393   :  { %v1327_v1 = vadd.f32 %v1309_v63, %v1282_v61 }
 0x395   :  { %v1339_v8 = vadd.f32 %v3457_v41, %v1327_v1  ;;  %v1367_v41 = vld [vmem:[#allocation3] ss:$2 sm:$0xff] }
 0x397   :  { %1366 = vst.msk [vmem:[#allocation3 + $0x44] sm:$0x7] %vm1365_vm13, %v1339_v8  ;;  %vm1762_vm13 = vcmask 392192  }
 0x39a   :  { %v2560_v16 = vpop.permute.xlu2 %2559 }
 0x39b   :  { %v2562_v19 = vunpack.i.h.bf16 %v2560_v16  ;;  %v2561_v54 = vunpack.i.l.bf16 %v2560_v16 }
 0x39e   :  { %v1405_v62 = vld [vmem:[#allocation3 + $0x43] ss:$2 sm:$0xf]  ;;  %v1395_v3 = vld [vmem:[#allocation3 + $0x42] ss:$2 sm:$0xf] }
 0x39f   :  { %1490 = vrot.lane.b32.xlu1 %v1405_v62, %s2633_s18  ;;  %1470 = vrot.lane.b32.xlu0 %v1395_v3, %s2630_s2  ;;  %v1385_v4 = vld [vmem:[#allocation3 + $0x41] ss:$2 sm:$0xf]  ;;  %v1375_v56 = vld [vmem:[#allocation3 + $0x40] ss:$2 sm:$0xf] }
 0x3a0   :  { %1450 = vrot.lane.b32.xlu2 %v1385_v4, %s2626_s14  ;;  %v2610_v4 = vld [vmem:[%s3638_s6] ss:$0 sm:$0xff] }
 0x3a7   :  { %v2550_v20 = vpop.permute.xlu0 %2549  ;;  %v2555_v7 = vpop.permute.xlu1 %2554 }
 0x3a8   :  { %v2552_v9 = vunpack.i.h.bf16 %v2550_v20  ;;  %v2551_v10 = vunpack.i.l.bf16 %v2550_v20  ;;  %1509 = vrot.lane.b32.xlu2 %v1432_v27, %s2632_s4  ;;  %v2557_v0 = vunpack.i.h.bf16 %v2555_v7  ;;  %v2556_v13 = vunpack.i.l.bf16 %v2555_v7 }
 0x3aa   :  { %v1517_v14 = vsel %vm568_vm7, %v1369_v60, %v2552_v9  ;;  %v1516_v15 = vsel %vm568_vm7, %v1367_v41, %v2551_v10 }
 0x3ab   :  { %v1522_v17 = vsel %vm1173_vm14, %v1517_v14, %v2557_v0  ;;  %v1521_v18 = vsel %vm1173_vm14, %v1516_v15, %v2556_v13 }
 0x3ac   :  { %v1527_v32 = vsel %vm1526_vm15, %v1521_v18, %v2561_v54  ;;  %v1528_v33 = vsel %vm1526_vm15, %v1522_v17, %v2562_v19 }
 0x3af   :  { %v2565_v2 = vpop.permute.xlu0 %2564 }
 0x3b0   :  { %v2567_v21 = vunpack.i.h.bf16 %v2565_v2  ;;  %v2566_v31 = vunpack.i.l.bf16 %v2565_v2 }
 0x3b2   :  { %v1533_v34 = vsel %vm1532_vm4, %v1527_v32, %v2566_v31  ;;  %v1534_v49 = vsel %vm1532_vm4, %v1528_v33, %v2567_v21 }
 0x3b3   :  { %v1544_v35 = vpack.c.bf16 %v1534_v49, %v1533_v34 }
 0x3b5   :  { %2225 = vmatmul.msk.bf16.vlgmr.msra.gmra.mxu2 %vm1562_vm6, %v1544_v35 }
 0x3c9   :  { %v2575_v29 = vpop.permute.xlu2 %2574 }
 0x3ca   :  { %v2577_v26 = vunpack.i.h.bf16 %v2575_v29  ;;  %v2576_v11 = vunpack.i.l.bf16 %v2575_v29 }
 0x3e1   :  { %v2580_v40 = vpop.permute.xlu0 %2579 }
 0x3e2   :  { %v2570_v53 = vpop.permute.xlu1 %2569  ;;  %v2582_v44 = vunpack.i.h.bf16 %v2580_v40  ;;  %v2581_v28 = vunpack.i.l.bf16 %v2580_v40 }
 0x3e3   :  { %v2572_v36 = vunpack.i.h.bf16 %v2570_v53  ;;  %v2571_v22 = vunpack.i.l.bf16 %v2570_v53 }
 0x3e5   :  { %v1518_v39 = vsel %vm568_vm7, %v1371_v37, %v2571_v22  ;;  %v1519_v6 = vsel %vm568_vm7, %v1373_v38, %v2572_v36  ;;  %v2281_v36 = vld [vmem:[%s3639_s7 + $0x20] sm:$0xff]  ;;  %v2280_v37 = vld [vmem:[%s3639_s7 + $0x18] sm:$0xff] }
 0x3e6   :  { %v1523_v42 = vsel %vm1173_vm14, %v1518_v39, %v2576_v11  ;;  %v1524_v43 = vsel %vm1173_vm14, %v1519_v6, %v2577_v26  ;;  %1823 = vmatpush.bf16.msrb.mxu3 %v2281_v36 }
 0x3e7   :  { %v1529_v47 = vsel %vm1526_vm15, %v1523_v42, %v2581_v28  ;;  %v1530_v48 = vsel %vm1526_vm15, %v1524_v43, %v2582_v44 }
 0x3ea   :  { %v2585_v45 = vpop.permute.xlu1 %2584  ;;  %1824 = vmatpush.bf16.msrb.mxu3 %v2280_v37  ;;  %v2611_v37 = vld [vmem:[%s3640_s8] ss:$0 sm:$0xff] }
 0x3eb   :  { %v2587_v23 = vunpack.i.h.bf16 %v2585_v45  ;;  %v2586_v46 = vunpack.i.l.bf16 %v2585_v45 }
 0x3ed   :  { %v1535_v50 = vsel %vm1532_vm4, %v1529_v47, %v2586_v46  ;;  %v1536_v51 = vsel %vm1532_vm4, %v1530_v48, %v2587_v23 }
 0x3ee   :  { %v1545_v52 = vpack.c.bf16 %v1536_v51, %v1535_v50 }
 0x3f0   :  { %2226 = vmatmul.msk.bf16.gmra.mxu2 %vm1562_vm6, %v1545_v52 }
 0x3fa   :  { %v1451_v55 = vpop.permute.xlu2 %1450 }
 0x3fb   :  { %v1520_v58 = vsel %vm568_vm7, %v1375_v56, %v1451_v55  ;;  %vm1655_vm7 = vcmask 123904  }
 0x3fc   :  { %1656 = vst.msk [vmem:[#allocation4 + $0x28] sm:$0x3] %vm1655_vm7, %v2628_v30 }
 0x402   :  { %v1510_v25 = vpop.permute.xlu2 %1509 }
 0x411   :  { %v1491_v24 = vpop.permute.xlu1 %1490  ;;  %v1471_v57 = vpop.permute.xlu0 %1470 }
 0x412   :  { %v1525_v59 = vsel %vm1173_vm14, %v1520_v58, %v1471_v57 }
 0x413   :  { %v1531_v61 = vsel %vm1526_vm15, %v1525_v59, %v1491_v24  ;;  %vm1766_vm15 = vcmask 523264  }
 0x414   :  { %v1537_v63 = vsel %vm1532_vm4, %v1531_v61, %v1510_v25 }
 0x415   :  { %v1546_v1 = vpack.c.bf16 %v1537_v63, %v1537_v63 }
 0x417   :  { %2227 = vmatmul.msk.bf16.gmra.mxu2 %vm1562_vm6, %v1546_v1  ;;  %v2279_v1 = vld [vmem:[%s3639_s7 + $0x10] sm:$0xff]  ;;  %vm1813_vm6 = vcmask 654336  }
 0x418   :  { %1825 = vmatpush.bf16.msrb.mxu3 %v2279_v1 }
 0x438   :  { %v1585_v8 = vpop.f32.mrf.mxu2 }
 0x439   :  { %1622 = vrot.lane.b32.xlu2 %v1585_v8, %s2634_s5  ;;  %v1602_v7 = vadd.f32 %v2610_v4, %v1585_v8  ;;  %v2278_v8 = vld [vmem:[%s3639_s7 + $0x8] sm:$0xff] }
 0x43a   :  { %1826 = vmatpush.bf16.msrb.mxu3 %v2278_v8 }
 0x43b   :  { %v1607_v0 = vmul.f32 0.25, %v1602_v7 }
 0x43d   :  { %v1612_v17 = vmax.f32 %v1602_v7, %v1607_v0 }
 0x440   :  { %v1587_v62 = vpop.f32.mrf.mxu2 }
 0x441   :  { %1624 = vrot.lane.b32.xlu0 %v1587_v62, %s2634_s5  ;;  %v1603_v27 = vadd.f32 %v2610_v4, %v1587_v62  ;;  %v2277_v62 = vld [vmem:[%s3639_s7] sm:$0xff] }
 0x442   :  { %1827 = vmatpush.bf16.msrb.mxu3 %v2277_v62 }
 0x443   :  { %v1608_v13 = vmul.f32 0.25, %v1603_v27 }
 0x445   :  { %v1613_v18 = vmax.f32 %v1603_v27, %v1608_v13 }
 0x473   :  { %v1590_v3 = vpop.f32.mrf.mxu2 }
 0x474   :  { %1626 = vrot.lane.b32.xlu1 %v1590_v3, %s2634_s5  ;;  %v1604_v9 = vadd.f32 %v2610_v4, %v1590_v3 }
 0x476   :  { %v1609_v14 = vmul.f32 0.25, %v1604_v9 }
 0x478   :  { %v1614_v19 = vmax.f32 %v1604_v9, %v1609_v14 }
 0x47b   :  { %v1592_v5 = vpop.f32.mrf.mxu2 }
 0x47c   :  { %1642 = vrot.lane.b32.xlu1 %v2610_v4, %s2634_s5  ;;  %1628 = vrot.lane.b32.xlu0 %v1592_v5, %s2634_s5  ;;  %v1605_v10 = vadd.f32 %v2610_v4, %v1592_v5 }
 0x47e   :  { %v1610_v15 = vmul.f32 0.25, %v1605_v10 }
 0x480   :  { %v1615_v54 = vmax.f32 %v1605_v10, %v1610_v15 }
 0x493   :  { %v1623_v16 = vpop.permute.xlu2 %1622 }
 0x494   :  { %v1637_v2 = vadd.f32 %v1623_v16, %v1612_v17 }
 0x49a   :  { %v1595_v12 = vpop.f32.mrf.mxu2 }
 0x49b   :  { %1630 = vrot.lane.b32.xlu2 %v1595_v12, %s2634_s5  ;;  %v1606_v21 = vadd.f32 %v2610_v4, %v1595_v12 }
 0x49d   :  { %v1611_v22 = vmul.f32 0.25, %v1606_v21 }
 0x49f   :  { %v1616_v38 = vmax.f32 %v1606_v21, %v1611_v22 }
 0x4a2   :  { %v1597_v20 = vpop.f32.mrf.mxu2 }
 0x4b3   :  { %v1625_v41 = vpop.permute.xlu0 %1624 }
 0x4b4   :  { %v1638_v31 = vadd.f32 %v1625_v41, %v1613_v18 }
 0x4e6   :  { %v1627_v60 = vpop.permute.xlu1 %1626 }
 0x4e7   :  { %v1639_v32 = vadd.f32 %v1627_v60, %v1614_v19 }
 0x4ee   :  { %v1643_v30 = vpop.permute.xlu1 %1642  ;;  %v1629_v33 = vpop.permute.xlu0 %1628 }
 0x4ef   :  { %v1645_v34 = vadd.f32 %v1643_v30, %v1637_v2  ;;  %v1646_v49 = vadd.f32 %v1643_v30, %v1638_v31  ;;  %v1647_v35 = vadd.f32 %v1643_v30, %v1639_v32  ;;  %v1640_v53 = vadd.f32 %v1629_v33, %v1615_v54 }
 0x4f1   :  { %1657 = vst.msk [vmem:[#allocation4 + $0x1] sm:$0xff] %vm1173_vm14, %v1645_v34  ;;  %v1648_v29 = vadd.f32 %v1643_v30, %v1640_v53 }
 0x4f2   :  { %1659 = vst.msk [vmem:[#allocation4 + $0xa] sm:$0xfe] %vm1658_vm5, %v1646_v49 }
 0x4f3   :  { %1661 = vst.msk [vmem:[#allocation4 + $0x12] sm:$0x1] %vm1660_vm8, %v1647_v35 }
 0x4f4   :  { %1663 = vst.msk [vmem:[#allocation4 + $0x13] sm:$0xfc] %vm1662_vm9, %v1647_v35 }
 0x4f5   :  { %1664 = vst.msk [vmem:[#allocation4 + $0x1b] sm:$0x3] %vm1655_vm7, %v1648_v29  ;;  %v1631_v39 = vpop.permute.xlu2 %1630 }
 0x4f6   :  { %1666 = vst.msk [vmem:[#allocation4 + $0x1c] sm:$0xf8] %vm1665_vm10, %v1648_v29  ;;  %v1641_v6 = vadd.f32 %v1631_v39, %v1616_v38 }
 0x4f8   :  { %v1649_v26 = vadd.f32 %v1643_v30, %v1641_v6  ;;  %v1692_v24 = vld [vmem:[#allocation4 + $0x1] sm:$0x1f] }
 0x4f9   :  { %v1693_v11 = vld [vmem:[#allocation4 + $0xb] sm:$0x1f] }
 0x4fa   :  { %1668 = vst.msk [vmem:[#allocation4 + $0x24] sm:$0x7] %vm1667_vm11, %v1649_v26  ;;  %v1681_v40 = vld [vmem:[#allocation4 + $0x2] ss:$2 sm:$0xff]  ;;  %v1675_v43 = vld [vmem:[#allocation4 + $0x1] ss:$2 sm:$0xff] }
 0x4fb   :  { %v1694_v42 = vld [vmem:[#allocation4 + $0x15] sm:$0x1f]  ;;  %v1687_v44 = vld [vmem:[#allocation4 + $0x3] ss:$2 sm:$0xff]  ;;  %v1697_v28 = vrot.slane %v1693_v11, 3 }
 0x4fc   :  { %v1700_v45 = vrot.slane %v1694_v42, 6  ;;  %v1671_v27 = vld [vmem:[#allocation4 + $0x10] ss:$2 sm:$0xff]  ;;  %v1669_v9 = vld [vmem:[#allocation4] ss:$2 sm:$0xff] }
 0x4fd   :  { %v1683_v23 = vld [vmem:[#allocation4 + $0x12] ss:$2 sm:$0xff]  ;;  %v1677_v46 = vld [vmem:[#allocation4 + $0x11] ss:$2 sm:$0xff]  ;;  %v1705_v57 = vsel %vm631_vm3, %v1692_v24, %v1697_v28 }
 0x4fe   :  { %v1689_v47 = vld [vmem:[#allocation4 + $0x13] ss:$2 sm:$0xff]  ;;  %v2593_v48 = vpack.i.bf16 %v1683_v23, %v1681_v40  ;;  %v2588_v50 = vpack.i.bf16 %v1677_v46, %v1675_v43  ;;  %v1706_v56 = vsel %vm221_vm1, %v1697_v28, %v1700_v45  ;;  %v2283_v46 = vld [vmem:[%s3641_s9 + $0x8] sm:$0xff] }
 0x4ff   :  { %v2598_v51 = vpack.i.bf16 %v1689_v47, %v1687_v44  ;;  %v1695_v52 = vld [vmem:[#allocation4 + $0x1f] sm:$0x1f]  ;;  %1953 = vmatpush.bf16.msra.mxu3 %v2283_v46 }
 0x500   :  { %v1703_v55 = vrot.slane %v1695_v52, 1  ;;  %2594 = vrot.lane.b32.xlu1 %v2593_v48, %s2632_s4  ;;  %2589 = vrot.lane.b32.xlu0 %v2588_v50, %s2630_s2  ;;  %v2638_v48 = vmov 4.0  }
 0x501   :  { %2599 = vrot.lane.b32.xlu2 %v2598_v51, %s2635_s26  ;;  %v1679_v59 = vld [vmem:[#allocation4 + $0x21] ss:$2 sm:$0xf]  ;;  %v1685_v61 = vld [vmem:[#allocation4 + $0x22] ss:$2 sm:$0xf]  ;;  %2613 = vrcp.f32 %v2638_v48 }
 0x502   :  { %v1708_v58 = vsel %vm1707_vm12, %v1706_v56, %v1703_v55  ;;  %v1691_v63 = vld [vmem:[#allocation4 + $0x23] ss:$2 sm:$0xf]  ;;  %v1673_v30 = vld [vmem:[#allocation4 + $0x20] ss:$2 sm:$0xf] }
 0x503   :  { %v2603_v25 = vpack.i.bf16 %v1708_v58, %v1705_v57 }
 0x507   :  { %v2614_v56 = vpop.eup %2613 }
 0x508   :  { %2604 = vrot.lane.b32.xlu0 %v2603_v25, %s2636_s0  ;;  %1716 = vrot.lane.b32.xlu1 %v1679_v59, %s2630_s2  ;;  %v1880_v25 = vmul.f32 4.0, %v2614_v56  ;;  %vm1884_vm7 = vweird.f32 %v2614_v56 }
 0x509   :  { %1728 = vrot.lane.b32.xlu2 %v1685_v61, %s2632_s4 }
 0x510   :  { %1740 = vrot.lane.b32.xlu0 %v1691_v63, %s2635_s26  ;;  %1751 = vrot.lane.b32.xlu1 %v1703_v55, %s2636_s0  ;;  %v2282_v55 = vld [vmem:[%s3641_s9] sm:$0xff]  ;;  %s2639_s9 = smov 88  }
 0x511   :  { %1954 = vmatpush.bf16.msra.mxu3 %v2282_v55 }
 0x55b   :  { %v2600_v60 = vpop.permute.xlu2 %2599 }
 0x55c   :  { %v2602_v14 = vunpack.i.h.bf16 %v2600_v60  ;;  %v2601_v15 = vunpack.i.l.bf16 %v2600_v60 }
 0x563   :  { %v1729_v49 = vpop.permute.xlu2 %1728 }
 0x572   :  { %v2595_v3 = vpop.permute.xlu1 %2594  ;;  %v2590_v4 = vpop.permute.xlu0 %2589 }
 0x573   :  { %v2592_v5 = vunpack.i.h.bf16 %v2590_v4  ;;  %v2591_v12 = vunpack.i.l.bf16 %v2590_v4  ;;  %v2597_v20 = vunpack.i.h.bf16 %v2595_v3  ;;  %v2596_v7 = vunpack.i.l.bf16 %v2595_v3 }
 0x574   :  { %v1881_v4 = vsub.f32 1.0, %v1880_v25 }
 0x575   :  { %v1757_v10 = vsel %vm1173_vm14, %v1671_v27, %v2592_v5  ;;  %v1756_v41 = vsel %vm1173_vm14, %v1669_v9, %v2591_v12 }
 0x576   :  { %v1760_v0 = vsel %vm1532_vm4, %v1757_v10, %v2597_v20  ;;  %v1759_v13 = vsel %vm1532_vm4, %v1756_v41, %v2596_v7 }
 0x577   :  { %v1763_v19 = vsel %vm1762_vm13, %v1759_v13, %v2601_v15  ;;  %v1764_v54 = vsel %vm1762_vm13, %v1760_v0, %v2602_v14  ;;  %v1882_v0 = vmul.f32 %v2614_v56, %v1881_v4 }
 0x57a   :  { %v2605_v16 = vpop.permute.xlu0 %2604  ;;  %v1717_v32 = vpop.permute.xlu1 %1716 }
 0x57b   :  { %v2607_v17 = vunpack.i.h.bf16 %v2605_v16  ;;  %v2606_v18 = vunpack.i.l.bf16 %v2605_v16  ;;  %v1758_v33 = vsel %vm1173_vm14, %v1673_v30, %v1717_v32  ;;  %vm1871_vm14 = vcmask 257024  }
 0x57c   :  { %v1761_v35 = vsel %vm1532_vm4, %v1758_v33, %v1729_v49 }
 0x57d   :  { %v1767_v2 = vsel %vm1766_vm15, %v1763_v19, %v2606_v18  ;;  %v1768_v21 = vsel %vm1766_vm15, %v1764_v54, %v2607_v17 }
 0x57e   :  { %v1781_v31 = vpack.c.bf16 %v1768_v21, %v1767_v2  ;;  %v1883_v2 = vadd.f32 %v2614_v56, %v1882_v0 }
 0x580   :  { %2248 = vmatmul.msk.bf16.vlgmr.msrb.gmra.mxu3 %vm1813_vm6, %v1781_v31 }
 0x582   :  { %v1741_v34 = vpop.permute.xlu0 %1740  ;;  %v1752_v36 = vpop.permute.xlu1 %1751 }
 0x583   :  { %v1765_v53 = vsel %vm1762_vm13, %v1761_v35, %v1741_v34 }
 0x584   :  { %v1769_v22 = vsel %vm1766_vm15, %v1765_v53, %v1752_v36  ;;  %v1885_v53 = vsel %vm1884_vm7, %v2614_v56, %v1883_v2  ;;  %v2286_v2 = vld [vmem:[%s3642_s10 + $0x10] sm:$0x10] }
 0x585   :  { %v1782_v29 = vpack.c.bf16 %v1769_v22, %v1769_v22 }
 0x590   :  { %2249 = vmatmul.msk.bf16.gmra.mxu3 %vm1813_vm6, %v1782_v29 }
 0x603   :  { %v1829_v38 = vpop.f32.mrf.mxu3 }
 0x604   :  { %v1841_v39 = vadd.f32 %v2611_v37, %v1829_v38  ;;  %1853 = vrot.lane.b32.xlu2 %v1829_v38, %s2637_s17 }
 0x606   :  { %v1844_v44 = vmul.f32 0.25, %v1841_v39 }
 0x608   :  { %v1847_v28 = vmax.f32 %v1841_v39, %v1844_v44 }
 0x60b   :  { %v1831_v6 = vpop.f32.mrf.mxu3 }
 0x60c   :  { %v1842_v26 = vadd.f32 %v2611_v37, %v1831_v6  ;;  %1855 = vrot.lane.b32.xlu0 %v1831_v6, %s2637_s17  ;;  %1865 = vrot.lane.b32.xlu2 %v2611_v37, %s2637_s17 }
 0x60e   :  { %v1845_v51 = vmul.f32 0.25, %v1842_v26 }
 0x610   :  { %v1848_v58 = vmax.f32 %v1842_v26, %v1845_v51 }
 0x613   :  { %v1834_v11 = vpop.f32.mrf.mxu3 }
 0x614   :  { %v1843_v40 = vadd.f32 %v2611_v37, %v1834_v11  ;;  %1857 = vrot.lane.b32.xlu1 %v1834_v11, %s2637_s17 }
 0x616   :  { %v1846_v61 = vmul.f32 0.25, %v1843_v40 }
 0x618   :  { %v1849_v20 = vmax.f32 %v1843_v40, %v1846_v61 }
 0x61b   :  { %v1836_v42 = vpop.f32.mrf.mxu3 }
 0x65e   :  { %v1854_v43 = vpop.permute.xlu2 %1853 }
 0x65f   :  { %v1862_v23 = vadd.f32 %v1854_v43, %v1847_v28 }
 0x666   :  { %v1866_v45 = vpop.permute.xlu2 %1865 }
 0x667   :  { %v1868_v47 = vadd.f32 %v1866_v45, %v1862_v23 }
 0x669   :  { %v1872_v50 = vsel %vm1871_vm14, %v1868_v47, 0.0  ;;  %v1889_v8 = vrot.slane %v1868_v47, 5 }
 0x66a   :  { %v1873_v52 = vrot.slane %v1872_v50, 4 }
 0x66c   :  { %v1874_v57 = vadd.f32 %v1873_v52, %v1872_v50 }
 0x66e   :  { %v1875_v1 = vrot.slane %v1874_v57, 2 }
 0x670   :  { %v1876_v10 = vadd.f32 %v1875_v1, %v1874_v57 }
 0x672   :  { %v1877_v17 = vrot.slane %v1876_v10, 1 }
 0x674   :  { %v1878_v34 = vadd.f32 %v1877_v17, %v1876_v10 }
 0x676   :  { %v1886_v37 = vmul.f32 %v1885_v53, %v1878_v34 }
 0x67e   :  { %v1856_v24 = vpop.permute.xlu0 %1855 }
 0x67f   :  { %v1863_v59 = vadd.f32 %v1856_v24, %v1848_v58 }
 0x681   :  { %v1869_v63 = vadd.f32 %v1866_v45, %v1863_v59 }
 0x683   :  { %v1890_v62 = vrot.slane %v1869_v63, 5  ;;  %v1901_v3 = vrot.slane %v1869_v63, 2  ;;  %v1912_v19 = vrot.slane %v1869_v63, 7 }
 0x685   :  { %v1891_v5 = vsel %vm238_vm2, %v1889_v8, %v1890_v62  ;;  %v1903_v12 = vsel %vm1871_vm14, %v1901_v3, 0.0 }
 0x686   :  { %v1893_v7 = vsel %vm1871_vm14, %v1891_v5, 0.0  ;;  %v1904_v27 = vrot.slane %v1903_v12, 4  ;;  %v1858_v9 = vpop.permute.xlu1 %1857 }
 0x687   :  { %v1894_v41 = vrot.slane %v1893_v7, 4  ;;  %v1864_v60 = vadd.f32 %v1858_v9, %v1849_v20 }
 0x688   :  { %v1905_v13 = vadd.f32 %v1904_v27, %v1903_v12 }
 0x689   :  { %v1895_v14 = vadd.f32 %v1894_v41, %v1893_v7  ;;  %v1870_v15 = vadd.f32 %v1866_v45, %v1864_v60 }
 0x68a   :  { %v1906_v16 = vrot.slane %v1905_v13, 2 }
 0x68b   :  { %v1896_v18 = vrot.slane %v1895_v14, 2  ;;  %v1913_v54 = vrot.slane %v1870_v15, 7 }
 0x68c   :  { %v1907_v21 = vadd.f32 %v1906_v16, %v1905_v13 }
 0x68d   :  { %v1897_v31 = vadd.f32 %v1896_v18, %v1895_v14  ;;  %v1914_v32 = vsel %vm204_vm0, %v1912_v19, %v1913_v54  ;;  %v2270_v54 = vld [vmem:[%s3642_s10 + $0x10] sm:$0xf] }
 0x68e   :  { %v1908_v30 = vrot.slane %v1907_v21, 1  ;;  %v1916_v33 = vsel %vm1871_vm14, %v1914_v32, 0.0 }
 0x68f   :  { %v1898_v49 = vrot.slane %v1897_v31, 1  ;;  %v1917_v35 = vrot.slane %v1916_v33, 4 }
 0x690   :  { %v1909_v36 = vadd.f32 %v1908_v30, %v1907_v21  ;;  %v2271_v21 = vor.u32 %v2286_v2, %v2270_v54 }
 0x691   :  { %v1899_v22 = vadd.f32 %v1898_v49, %v1897_v31  ;;  %v1918_v29 = vadd.f32 %v1917_v35, %v1916_v33  ;;  %v2285_v49 = vld [vmem:[%s3642_s10 + $0x8] sm:$0xff] }
 0x692   :  { %v1910_v6 = vmul.f32 %v1909_v36, %v1885_v53  ;;  %v2107_v30 = vsel %vm631_vm3, %v2271_v21, 0 }
 0x693   :  { %v1900_v38 = vmul.f32 %v1899_v22, %v1885_v53  ;;  %v1919_v39 = vrot.slane %v1918_v29, 2  ;;  %2114 = vmatpush.bf16.msrb.mxu2 %v2107_v30 }
 0x695   :  { %v1920_v26 = vadd.f32 %v1919_v39, %v1918_v29  ;;  %v1924_v11 = vsel %vm204_vm0, %v1886_v37, %v1900_v38  ;;  %v2284_v38 = vld [vmem:[%s3642_s10] sm:$0xff]  ;;  %vm2060_vm0 = vcmask 76800  }
 0x696   :  { %v1925_v40 = vsel %vm221_vm1, %v1924_v11, %v1910_v6  ;;  %vm2102_vm1 = vcmask 343040  }
 0x697   :  { %v1921_v42 = vrot.slane %v1920_v26, 1  ;;  %2115 = vmatpush.bf16.msrb.mxu2 %v2285_v49 }
 0x699   :  { %v1922_v43 = vadd.f32 %v1921_v42, %v1920_v26 }
 0x69b   :  { %v1923_v44 = vmul.f32 %v1922_v43, %v1885_v53  ;;  %2116 = vmatpush.bf16.msrb.mxu2 %v2284_v38 }
 0x69d   :  { %v3605_v28 = vsel %vm238_vm2, %v1925_v40, %v1923_v44  ;;  %vm2122_vm2 = vcmask 3072  }
 0x69e   :  { %v1927_v45 = vpack.c.bf16 %v3605_v28, %v3605_v28 }
 0x6a0   :  { %2258 = vmatmul.msk.bf16.vlgmr.msra.gmra.mxu3 %vm1532_vm4, %v1927_v45 }
 0x723   :  { %v1956_v23 = vpop.f32.mrf.mxu3 }
 0x724   :  { %v1964_v46 = vperm.slane %v1956_v23, 0  ;;  %v1962_v47 = vrot.slane %v1956_v23, 2  ;;  %v1961_v48 = vrot.slane %v1956_v23, 1  ;;  %v1963_v57 = vrot.slane %v1956_v23, 3 }
 0x726   :  { %v1972_v50 = vsub.f32 %v1964_v46, %v1956_v23  ;;  %v1966_v52 = vperm.slane %v1962_v47, 0  ;;  %v1965_v55 = vperm.slane %v1961_v48, 0  ;;  %v1967_v61 = vperm.slane %v1963_v57, 0 }
 0x728   :  { %v1976_v51 = vand.u32 2147483647, %v1972_v50  ;;  %v1974_v58 = vsub.f32 %v1966_v52, %v1956_v23  ;;  %v1973_v24 = vsub.f32 %v1965_v55, %v1956_v23  ;;  %v1975_v63 = vsub.f32 %v1967_v61, %v1956_v23 }
 0x72a   :  { %2032 = vrot.lane.b32.xlu2 %v1976_v51, %s2639_s9  ;;  %2016 = vrot.lane.b32.xlu1 %v1976_v51, %s2640_s20  ;;  %v1978_v59 = vand.u32 2147483647, %v1974_v58  ;;  %v1977_v25 = vand.u32 2147483647, %v1973_v24  ;;  %v1979_v1 = vand.u32 2147483647, %v1975_v63 }
 0x72b   :  { %1984 = vrot.lane.b32.xlu0 %v1976_v51, %s2641_s30  ;;  %v1958_v56 = vpop.f32.mrf.mxu3 }
 0x732   :  { %1988 = vrot.lane.b32.xlu2 %v1978_v59, %s2641_s30  ;;  %1986 = vrot.lane.b32.xlu1 %v1977_v25, %s2641_s30 }
 0x733   :  { %2000 = vrot.lane.b32.xlu0 %v1976_v51, %s2642_s21 }
 0x73a   :  { %1990 = vrot.lane.b32.xlu2 %v1979_v1, %s2641_s30  ;;  %2002 = vrot.lane.b32.xlu1 %v1977_v25, %s2642_s21 }
 0x73b   :  { %2004 = vrot.lane.b32.xlu0 %v1978_v59, %s2642_s21 }
 0x742   :  { %2018 = vrot.lane.b32.xlu2 %v1977_v25, %s2640_s20  ;;  %2020 = vrot.lane.b32.xlu1 %v1978_v59, %s2640_s20 }
 0x743   :  { %2006 = vrot.lane.b32.xlu0 %v1979_v1, %s2642_s21 }
 0x74a   :  { %2036 = vrot.lane.b32.xlu2 %v1978_v59, %s2639_s9  ;;  %2022 = vrot.lane.b32.xlu1 %v1979_v1, %s2640_s20 }
 0x74b   :  { %2034 = vrot.lane.b32.xlu0 %v1977_v25, %s2639_s9 }
 0x753   :  { %2038 = vrot.lane.b32.xlu0 %v1979_v1, %s2639_s9 }
 0x784   :  { %v2033_v8 = vpop.permute.xlu2 %2032 }
 0x78c   :  { %v1989_v3 = vpop.permute.xlu2 %1988 }
 0x78d   :  { %v1998_v0 = vadd.f32 %v1989_v3, %v1978_v59  ;;  %v17_v59 = vstv %s3643_s11 }
 0x78e   :  { %18 = vst [vmem:[#allocation5] sm:$0x1] %v17_v59 }
 0x794   :  { %v1991_v20 = vpop.permute.xlu2 %1990 }
 0x795   :  { %v1999_v22 = vadd.f32 %v1991_v20, %v1979_v1  ;;  %v2612_v1 = vld [vmem:[#allocation5] ss:$0 sm:$0xff] }
 0x79c   :  { %v2017_v62 = vpop.permute.xlu1 %2016  ;;  %v2019_v41 = vpop.permute.xlu2 %2018 }
 0x79d   :  { %v1985_v4 = vpop.permute.xlu0 %1984 }
 0x79e   :  { %v1996_v27 = vadd.f32 %v1985_v4, %v1976_v51 }
 0x7a4   :  { %v1987_v5 = vpop.permute.xlu1 %1986  ;;  %v2037_v32 = vpop.permute.xlu2 %2036 }
 0x7a5   :  { %v2001_v12 = vpop.permute.xlu0 %2000  ;;  %v1997_v15 = vadd.f32 %v1987_v5, %v1977_v25 }
 0x7a6   :  { %v2012_v10 = vadd.f32 %v2001_v12, %v1996_v27 }
 0x7a8   :  { %v2028_v60 = vadd.f32 %v2017_v62, %v2012_v10 }
 0x7aa   :  { %v2044_v17 = vadd.f32 %v2033_v8, %v2028_v60 }
 0x7ac   :  { %v2003_v7 = vpop.permute.xlu1 %2002  ;;  %v2048_v31 = vsub.f32 0.0, %v2044_v17 }
 0x7ad   :  { %v2005_v9 = vpop.permute.xlu0 %2004  ;;  %v2013_v18 = vadd.f32 %v2003_v7, %v1997_v15 }
 0x7ae   :  { %v2014_v16 = vadd.f32 %v2005_v9, %v1998_v0  ;;  %v2052_v36 = vmul.f32 1.442695, %v2048_v31 }
 0x7af   :  { %v2029_v34 = vadd.f32 %v2019_v41, %v2013_v18 }
 0x7b0   :  { %2615 = vpow2.f32 %v2052_v36 }
 0x7b4   :  { %v2021_v14 = vpop.permute.xlu1 %2020 }
 0x7b5   :  { %v2007_v13 = vpop.permute.xlu0 %2006  ;;  %v2030_v19 = vadd.f32 %v2021_v14, %v2014_v16 }
 0x7b6   :  { %v2015_v6 = vadd.f32 %v2007_v13, %v1999_v22  ;;  %v2616_v45 = vpop.eup %2615 }
 0x7b7   :  { %v2046_v33 = vadd.f32 %v2037_v32, %v2030_v19  ;;  %v2061_v48 = vsel %vm2060_vm0, %v2616_v45, 0.0 }
 0x7b9   :  { %v2050_v29 = vsub.f32 0.0, %v2046_v33 }
 0x7bb   :  { %v2056_v11 = vmul.f32 1.442695, %v2050_v29 }
 0x7bc   :  { %v2023_v39 = vpop.permute.xlu1 %2022 }
 0x7bd   :  { %v2035_v35 = vpop.permute.xlu0 %2034  ;;  %v2031_v40 = vadd.f32 %v2023_v39, %v2015_v6 }
 0x7be   :  { %v2045_v53 = vadd.f32 %v2035_v35, %v2029_v34 }
 0x7c0   :  { %v2049_v37 = vsub.f32 0.0, %v2045_v53 }
 0x7c2   :  { %v2054_v26 = vmul.f32 1.442695, %v2049_v37 }
 0x7c4   :  { %2617 = vpow2.f32 %v2054_v26 }
 0x7c5   :  { %v2039_v42 = vpop.permute.xlu0 %2038  ;;  %2619 = vpow2.f32 %v2056_v11 }
 0x7c6   :  { %v2047_v43 = vadd.f32 %v2039_v42, %v2031_v40 }
 0x7c8   :  { %v2051_v44 = vsub.f32 0.0, %v2047_v43 }
 0x7ca   :  { %v2618_v23 = vpop.eup %2617  ;;  %v2058_v46 = vmul.f32 1.442695, %v2051_v44 }
 0x7cb   :  { %v2062_v47 = vsel %vm2060_vm0, %v2618_v23, 0.0  ;;  %v2620_v50 = vpop.eup %2619 }
 0x7cc   :  { %2621 = vpow2.f32 %v2058_v46  ;;  %v2063_v51 = vadd.f32 %v2062_v47, %v2061_v48  ;;  %v2064_v52 = vsel %vm2060_vm0, %v2620_v50, 0.0 }
 0x7ce   :  { %v2065_v56 = vadd.f32 %v2064_v52, %v2063_v51 }
 0x7d2   :  { %v2622_v55 = vpop.eup %2621 }
 0x7d3   :  { %v2066_v58 = vsel %vm2060_vm0, %v2622_v55, 0.0 }
 0x7d4   :  { %v2067_v24 = vadd.f32 %v2066_v58, %v2065_v56 }
 0x7d6   :  { %v2259_v57 = vadd.f32 -1.0, %v2067_v24 }
 0x7d8   :  { %2070 = vrot.lane.b32.xlu1 %v2259_v57, %s2632_s4 }
 0x84a   :  { %v2071_v25 = vpop.permute.xlu1 %2070 }
 0x84b   :  { %v2073_v61 = vsel %vm1532_vm4, %v3605_v28, %v2071_v25 }
 0x84c   :  { %v2074_v63 = vpack.c.bf16 %v2073_v61, %v2073_v61 }
 0x84e   :  { %2272 = vmatmul.msk.bf16.vlgmr.msrb.gmra.mxu2 %vm2102_vm1, %v2074_v63 }
 0x8d1   :  { %v2118_v8 = vpop.f32.mrf.mxu2 }
 0x8d2   :  { %v2119_v62 = vadd.f32 %v2612_v1, %v2118_v8 }
 0x8d4   :  { %2123 = vst.msk [vmem:[%s3644_s12] sm:$0xf] %vm2122_vm2, %v2119_v62 }
 0x8d9   :  { %v2120_v3 = vpop.f32.mrf.mxu2 }

</bundles_post_ra>
